<compile_context>
chip_gen: v7x
topology: tpu7x:2x2x1
jax: 0.10.0
libtpu: 0.0.40
codegen_flags: <defaults>
</compile_context>

<pallas_src>
import functools

import jax
import jax.numpy as jnp
from jax import lax
from jax.experimental import pallas as pl
from jax.experimental.pallas import tpu as pltpu


_VMEM_LIMIT = 40 * 1024 * 1024   # fits v7x's 64 MiB VMEM with double-buffer headroom


def _pick_tile(n, target):
    """Largest divisor of n that is <= target and sublane-friendly (else n)."""
    if n <= target:
        return n
    for t in range(target, 0, -1):
        if n % t == 0 and t % 8 == 0:
            return t
    return n


# ----------------------------------------------------------------------------
# Linear projection kernels (row-tiled, PyTorch weight layout, optional bias)
# ----------------------------------------------------------------------------

def _linear_kernel(x_ref, w_ref, o_ref):
    # x: (TM, K), w: (Nout, K)  ->  o: (TM, Nout)   (contract K, no transpose)
    acc = lax.dot_general(x_ref[...], w_ref[...], (((1,), (1,)), ((), ())),
                          preferred_element_type=jnp.float32)
    o_ref[...] = acc.astype(o_ref.dtype)


def _linear_bias_kernel(x_ref, w_ref, b_ref, o_ref):
    acc = lax.dot_general(x_ref[...], w_ref[...], (((1,), (1,)), ((), ())),
                          preferred_element_type=jnp.float32)
    acc = acc + b_ref[...].astype(jnp.float32)
    o_ref[...] = acc.astype(o_ref.dtype)


def linear(x2d, w, b=None, *, block_m=256):
    """x2d (M, K) @ w(Nout, K)^T + b -> (M, Nout). w/b kept in PyTorch layout."""
    M, K = x2d.shape
    Nout = w.shape[0]
    tm = _pick_tile(M, block_m)
    grid = (M // tm,)
    x_spec = pl.BlockSpec((tm, K), lambda i: (i, 0))
    w_spec = pl.BlockSpec((Nout, K), lambda i: (0, 0))
    o_spec = pl.BlockSpec((tm, Nout), lambda i: (i, 0))
    params = pltpu.CompilerParams(dimension_semantics=("parallel",),
                                  vmem_limit_bytes=_VMEM_LIMIT)
    out_shape = jax.ShapeDtypeStruct((M, Nout), x2d.dtype)
    if b is None:
        return pl.pallas_call(
            _linear_kernel, out_shape=out_shape, grid=grid,
            in_specs=[x_spec, w_spec], out_specs=o_spec,
            compiler_params=params,
        )(x2d, w)
    b2d = b.reshape(1, Nout)
    b_spec = pl.BlockSpec((1, Nout), lambda i: (0, 0))
    return pl.pallas_call(
        _linear_bias_kernel, out_shape=out_shape, grid=grid,
        in_specs=[x_spec, w_spec, b_spec], out_specs=o_spec,
        compiler_params=params,
    )(x2d, w, b2d)


# ----------------------------------------------------------------------------
# Flash-style twicing attention (two online-softmax passes)
# ----------------------------------------------------------------------------

def _online_softmax_step(q, k, val, o_ref, m_sc, l_sc, acc_sc, scale):
    """One kv-tile of flash attention; accumulators live in VMEM scratch."""
    kv_i = pl.program_id(3)

    @pl.when(kv_i == 0)
    def _():
        m_sc[...] = jnp.full(m_sc.shape, -jnp.inf, jnp.float32)
        l_sc[...] = jnp.zeros(l_sc.shape, jnp.float32)
        acc_sc[...] = jnp.zeros(acc_sc.shape, jnp.float32)

    # scores: contract the head dim of q (Tq, d) with k (Tk, d) -> (Tq, Tk)
    s = lax.dot_general(q, k, (((1,), (1,)), ((), ())),
                        preferred_element_type=jnp.float32) * scale
    m_prev = m_sc[...]
    m_new = jnp.maximum(m_prev, jnp.max(s, axis=-1, keepdims=True))
    alpha = jnp.exp(m_prev - m_new)
    p = jnp.exp(s - m_new)
    l_sc[...] = alpha * l_sc[...] + jnp.sum(p, axis=-1, keepdims=True)
    acc_sc[...] = alpha * acc_sc[...] + jnp.dot(
        p.astype(val.dtype), val, preferred_element_type=jnp.float32)
    m_sc[...] = m_new

    @pl.when(kv_i == pl.num_programs(3) - 1)
    def _():
        inv_l = pl.reciprocal(l_sc[...], approx=True)
        o_ref[0, 0] = (acc_sc[...] * inv_l).astype(o_ref.dtype)


def _attn_av_kernel(q_ref, k_ref, v_ref, o_ref, m_sc, l_sc, acc_sc, *, scale):
    # pass 1: AV = softmax(q k^T * scale) @ v
    _online_softmax_step(q_ref[0, 0], k_ref[0, 0], v_ref[0, 0],
                         o_ref, m_sc, l_sc, acc_sc, scale)


def _attn_twicing_kernel(q_ref, k_ref, v_ref, av_ref, o_ref,
                         m_sc, l_sc, acc_sc, *, scale):
    # pass 2: out = softmax(q k^T * scale) @ (2 v - AV)  ==  AV + A @ (v - AV)
    val = (2.0 * v_ref[0, 0].astype(jnp.float32)
           - av_ref[0, 0].astype(jnp.float32)).astype(v_ref.dtype)
    _online_softmax_step(q_ref[0, 0], k_ref[0, 0], val,
                         o_ref, m_sc, l_sc, acc_sc, scale)


def _attention_call(kernel, args, scale, block_q, block_kv):
    q = args[0]
    B, H, N, d = q.shape
    tq = block_q if block_q is not None else _pick_tile(N, 256)
    tk = block_kv if block_kv is not None else _pick_tile(N, 512)
    assert N % tq == 0 and N % tk == 0, "attention block sizes must divide N"
    grid = (B, H, N // tq, N // tk)
    q_spec = pl.BlockSpec((1, 1, tq, d), lambda b, h, qi, ki: (b, h, qi, 0))
    kv_spec = pl.BlockSpec((1, 1, tk, d), lambda b, h, qi, ki: (b, h, ki, 0))
    o_spec = pl.BlockSpec((1, 1, tq, d), lambda b, h, qi, ki: (b, h, qi, 0))
    in_specs = [q_spec, kv_spec] + [kv_spec] * (len(args) - 2)
    return pl.pallas_call(
        functools.partial(kernel, scale=scale),
        out_shape=jax.ShapeDtypeStruct((B, H, N, d), q.dtype),
        grid=grid,
        in_specs=in_specs,
        out_specs=o_spec,
        scratch_shapes=[pltpu.VMEM((tq, 1), jnp.float32),   # running max
                        pltpu.VMEM((tq, 1), jnp.float32),   # running denom
                        pltpu.VMEM((tq, d), jnp.float32)],  # output accumulator
        compiler_params=pltpu.CompilerParams(
            dimension_semantics=("parallel", "parallel", "parallel", "arbitrary"),
            vmem_limit_bytes=_VMEM_LIMIT),
    )(*args)


def sharp_attention_core(q, k, v, scale, *, block_q=None, block_kv=None):
    """(B, H, N, d) x3 -> twiced attention output (B, H, N, d)."""
    av = _attention_call(_attn_av_kernel, (q, k, v), scale, block_q, block_kv)
    return _attention_call(_attn_twicing_kernel, (q, k, v, av), scale,
                           block_q, block_kv)


# ----------------------------------------------------------------------------
# Module wrapper (glue: reshapes / head split-merge in plain JAX)
# ----------------------------------------------------------------------------

def sharp_attention_forward(x, w_qkv, b_qkv, w_proj, b_proj, *, num_heads,
                            layer_num=None, v0=None, xv_diff=None,
                            block_q=None, block_kv=None):
    """x: (B, N, C). Weights in PyTorch layout: w_qkv (3C, C), w_proj (C, C)."""
    del v0  # unused by the reference forward
    B, N, C = x.shape
    d = C // num_heads
    scale = d ** (-0.5)

    # qkv projection (row-tiled Pallas matmul; no fabricated zero bias)
    qkv = linear(x.reshape(B * N, C), w_qkv, b_qkv)               # (B*N, 3C)

    # reshape(B, N, 3, H, d).permute(2, 0, 3, 1, 4) -> (3, B, H, N, d)
    # TODO(synk): with head_dim < 128 a direct index_map head split/merge on
    # the (B*N, 3C) slab needs lane-misaligned blocks, so the split/merge is
    # left to XLA transposes here.
    qkv = qkv.reshape(B, N, 3, num_heads, d).transpose(2, 0, 3, 1, 4)
    head_q, head_k, head_v = qkv[0], qkv[1], qkv[2]

    # twicing attention (two flash-style Pallas passes)
    out_heads = sharp_attention_core(head_q, head_k, head_v, scale,
                                     block_q=block_q, block_kv=block_kv)

    # merge heads: (B, H, N, d) -> (B, N, C), then output projection
    out = out_heads.transpose(0, 2, 1, 3).reshape(B * N, C)
    out = linear(out, w_proj, b_proj).reshape(B, N, C)

    # attn_drop / proj_drop are identity at p=0 (eval)
    if layer_num == 0:
        return out, head_v, xv_diff
    return out, xv_diff


# ----------------------------------------------------------------------------
# Pure-JAX reference + demo / smoke test
# ----------------------------------------------------------------------------

def _reference_forward(x, w_qkv, b_qkv, w_proj, b_proj, num_heads):
    B, N, C = x.shape
    d = C // num_heads
    qkv = x @ w_qkv.T
    if b_qkv is not None:
        qkv = qkv + b_qkv
    qkv = qkv.reshape(B, N, 3, num_heads, d).transpose(2, 0, 3, 1, 4)
    q, k, v = qkv[0], qkv[1], qkv[2]
    a = jax.nn.softmax(jnp.einsum('bhnd,bhmd->bhnm', q, k) * d ** (-0.5), axis=-1)
    av = jnp.einsum('bhnm,bhmd->bhnd', a, v)
    out = av + jnp.einsum('bhnm,bhmd->bhnd', a, v - av)
    out = out.transpose(0, 2, 1, 3).reshape(B, N, C)
    return out @ w_proj.T + b_proj


if __name__ == "__main__":
    B, N, C, H = 2, 32, 64, 4          # head_dim = 16

    key = jax.random.PRNGKey(0)
    kx, kw1, kw2, kb2 = jax.random.split(key, 4)
    x = jax.random.normal(kx, (B, N, C), jnp.float32)
    w_qkv = jax.random.normal(kw1, (3 * C, C), jnp.float32) * 0.1   # Linear(C,3C).weight
    w_proj = jax.random.normal(kw2, (C, C), jnp.float32) * 0.1      # Linear(C,C).weight
    b_proj = jax.random.normal(kb2, (C,), jnp.float32) * 0.1        # Linear(C,C).bias

    # small explicit blocks so the demo exercises the multi-tile flash path
    fwd = jax.jit(functools.partial(
        sharp_attention_forward, num_heads=H, block_q=16, block_kv=8))
    out, xv_diff = fwd(x, w_qkv, None, w_proj, b_proj)
    out = jax.block_until_ready(out)

    assert out.shape == (B, N, C)
    assert xv_diff is None

    ref = _reference_forward(x, w_qkv, None, w_proj, b_proj, H)
    max_err = float(jnp.max(jnp.abs(out - ref)))
    assert max_err < 1e-2, f"max abs error vs reference: {max_err}"

    print("KERNEL_OK")
</pallas_src>

<mosaic_0001>
module attributes {stable_mosaic.version = 11 : i64} {
  func.func @_linear_kernel(%arg0: i32, %arg1: memref<64x64xf32, #tpu.memory_space<vmem>>, %arg2: memref<192x64xf32, #tpu.memory_space<vmem>>, %arg3: memref<64x192xf32, #tpu.memory_space<vmem>>) attributes {dimension_semantics = [#tpu.dimension_semantics<parallel>], iteration_bounds = array<i64: 1>, scalar_prefetch = 0 : i64, scratch_operands = 0 : i64, tpu.core_type = #tpu.core_type<tc>, window_params = [{transform_indices = @transform_0, window_bounds = array<i64: 64, 64>}, {pipeline_mode = #tpu.pipeline_mode<synchronous>, transform_indices = @transform_1, window_bounds = array<i64: 192, 64>}, {transform_indices = @transform_2, window_bounds = array<i64: 64, 192>}]} {
    %c0 = arith.constant 0 : index
    %c0_0 = arith.constant 0 : index
    %0 = vector.load %arg1[%c0, %c0_0] : memref<64x64xf32, #tpu.memory_space<vmem>>, vector<64x64xf32>
    %c0_1 = arith.constant 0 : index
    %c0_2 = arith.constant 0 : index
    %1 = vector.load %arg2[%c0_1, %c0_2] : memref<192x64xf32, #tpu.memory_space<vmem>>, vector<192x64xf32>
    %cst = arith.constant dense<0.000000e+00> : vector<64x192xf32>
    %2 = tpu.matmul %0, %1, %cst {dimension_numbers = #tpu.dot_dimension_numbers<[1], [1], [0], [0], [0, 0, 1, 0], [], []>} : vector<64x64xf32>, vector<192x64xf32>, vector<64x192xf32> -> vector<64x192xf32>
    %c0_3 = arith.constant 0 : index
    %c0_4 = arith.constant 0 : index
    %3 = vector.load %arg3[%c0_3, %c0_4] : memref<64x192xf32, #tpu.memory_space<vmem>>, vector<64x192xf32>
    tpu.vector_store %arg3[%c0_3, %c0_4], %2 {strides = array<i32>} : memref<64x192xf32, #tpu.memory_space<vmem>>, vector<64x192xf32>,
    return
  }
  func.func @transform_0(%arg0: i32) -> (i32, i32) {
    %c0_i32 = arith.constant 0 : i32
    %c0_i32_0 = arith.constant 0 : i32
    return %arg0, %c0_i32 : i32, i32
  }
  func.func @transform_1(%arg0: i32) -> (i32, i32) {
    %c0_i32 = arith.constant 0 : i32
    %c0_i32_0 = arith.constant 0 : i32
    %c0_i32_1 = arith.constant 0 : i32
    return %c0_i32, %c0_i32_0 : i32, i32
  }
  func.func @transform_2(%arg0: i32) -> (i32, i32) {
    %c0_i32 = arith.constant 0 : i32
    %c0_i32_0 = arith.constant 0 : i32
    return %arg0, %c0_i32 : i32, i32
  }
}

module attributes {stable_mosaic.version = 11 : i64} {
  func.func @_attn_av_kernel(%arg0: i32, %arg1: i32, %arg2: i32, %arg3: i32, %arg4: memref<1x1x16x16xf32, #tpu.memory_space<vmem>>, %arg5: memref<1x1x8x16xf32, #tpu.memory_space<vmem>>, %arg6: memref<1x1x8x16xf32, #tpu.memory_space<vmem>>, %arg7: memref<1x1x16x16xf32, #tpu.memory_space<vmem>>, %arg8: memref<16x1xf32, #tpu.memory_space<vmem>>, %arg9: memref<16x1xf32, #tpu.memory_space<vmem>>, %arg10: memref<16x16xf32, #tpu.memory_space<vmem>>) attributes {dimension_semantics = [#tpu.dimension_semantics<parallel>, #tpu.dimension_semantics<parallel>, #tpu.dimension_semantics<parallel>, #tpu.dimension_semantics<arbitrary>], iteration_bounds = array<i64: 2, 4, 2, 4>, scalar_prefetch = 0 : i64, scratch_operands = 3 : i64, tpu.core_type = #tpu.core_type<tc>, window_params = [{transform_indices = @transform_0, window_bounds = array<i64: 1, 1, 16, 16>}, {transform_indices = @transform_1, window_bounds = array<i64: 1, 1, 8, 16>}, {transform_indices = @transform_2, window_bounds = array<i64: 1, 1, 8, 16>}, {transform_indices = @transform_3, window_bounds = array<i64: 1, 1, 16, 16>}]} {
    %c0 = arith.constant 0 : index
    %c0_0 = arith.constant 0 : index
    %c0_1 = arith.constant 0 : index
    %c0_2 = arith.constant 0 : index
    %0 = vector.load %arg4[%c0, %c0_0, %c0_1, %c0_2] : memref<1x1x16x16xf32, #tpu.memory_space<vmem>>, vector<1x1x16x16xf32>
    %1 = vector.shape_cast %0 : vector<1x1x16x16xf32> to vector<16x16xf32>
    %c0_3 = arith.constant 0 : index
    %c0_4 = arith.constant 0 : index
    %c0_5 = arith.constant 0 : index
    %c0_6 = arith.constant 0 : index
    %2 = vector.load %arg5[%c0_3, %c0_4, %c0_5, %c0_6] : memref<1x1x8x16xf32, #tpu.memory_space<vmem>>, vector<1x1x8x16xf32>
    %3 = vector.shape_cast %2 : vector<1x1x8x16xf32> to vector<8x16xf32>
    %c0_7 = arith.constant 0 : index
    %c0_8 = arith.constant 0 : index
    %c0_9 = arith.constant 0 : index
    %c0_10 = arith.constant 0 : index
    %4 = vector.load %arg6[%c0_7, %c0_8, %c0_9, %c0_10] : memref<1x1x8x16xf32, #tpu.memory_space<vmem>>, vector<1x1x8x16xf32>
    %5 = vector.shape_cast %4 : vector<1x1x8x16xf32> to vector<8x16xf32>
    %c0_i32 = arith.constant 0 : i32
    %6 = arith.cmpi eq, %arg3, %c0_i32 : i32
    %7 = arith.extui %6 : i1 to i32
    %c0_i32_11 = arith.constant 0 : i32
    %8 = arith.cmpi ne, %7, %c0_i32_11 : i32
    scf.if %8 {
      %cst_29 = arith.constant 0xFF800000 : f32
      %37 = vector.broadcast %cst_29 : f32 to vector<16x1xf32>
      %c0_30 = arith.constant 0 : index
      %c0_31 = arith.constant 0 : index
      %38 = vector.load %arg8[%c0_30, %c0_31] : memref<16x1xf32, #tpu.memory_space<vmem>>, vector<16x1xf32>
      tpu.vector_store %arg8[%c0_30, %c0_31], %37 {strides = array<i32>} : memref<16x1xf32, #tpu.memory_space<vmem>>, vector<16x1xf32>,
      %cst_32 = arith.constant 0.000000e+00 : f32
      %39 = vector.broadcast %cst_32 : f32 to vector<16x1xf32>
      %c0_33 = arith.constant 0 : index
      %c0_34 = arith.constant 0 : index
      %40 = vector.load %arg9[%c0_33, %c0_34] : memref<16x1xf32, #tpu.memory_space<vmem>>, vector<16x1xf32>
      tpu.vector_store %arg9[%c0_33, %c0_34], %39 {strides = array<i32>} : memref<16x1xf32, #tpu.memory_space<vmem>>, vector<16x1xf32>,
      %cst_35 = arith.constant 0.000000e+00 : f32
      %41 = vector.broadcast %cst_35 : f32 to vector<16x16xf32>
      %c0_36 = arith.constant 0 : index
      %c0_37 = arith.constant 0 : index
      %42 = vector.load %arg10[%c0_36, %c0_37] : memref<16x16xf32, #tpu.memory_space<vmem>>, vector<16x16xf32>
      tpu.vector_store %arg10[%c0_36, %c0_37], %41 {strides = array<i32>} : memref<16x16xf32, #tpu.memory_space<vmem>>, vector<16x16xf32>,
    } else {
    }
    %cst = arith.constant dense<0.000000e+00> : vector<16x8xf32>
    %9 = tpu.matmul %1, %3, %cst {dimension_numbers = #tpu.dot_dimension_numbers<[1], [1], [0], [0], [0, 0, 1, 0], [], []>} : vector<16x16xf32>, vector<8x16xf32>, vector<16x8xf32> -> vector<16x8xf32>
    %cst_12 = arith.constant 2.500000e-01 : f32
    %10 = vector.broadcast %cst_12 : f32 to vector<16x8xf32>
    %11 = arith.mulf %9, %10 : vector<16x8xf32>
    %c0_13 = arith.constant 0 : index
    %c0_14 = arith.constant 0 : index
    %12 = vector.load %arg8[%c0_13, %c0_14] : memref<16x1xf32, #tpu.memory_space<vmem>>, vector<16x1xf32>
    %cst_15 = arith.constant dense<0xFF800000> : vector<16xf32>
    %13 = vector.multi_reduction <maximumf>, %11, %cst_15 [1] : vector<16x8xf32> to vector<16xf32>
    %14 = vector.shape_cast %13 : vector<16xf32> to vector<16x1xf32>
    %15 = arith.maximumf %12, %14 : vector<16x1xf32>
    %16 = arith.subf %12, %15 : vector<16x1xf32>
    %17 = math.exp %16 : vector<16x1xf32>
    %18 = vector.broadcast %15 : vector<16x1xf32> to vector<16x8xf32>
    %19 = arith.subf %11, %18 : vector<16x8xf32>
    %20 = math.exp %19 : vector<16x8xf32>
    %c0_16 = arith.constant 0 : index
    %c0_17 = arith.constant 0 : index
    %21 = vector.load %arg9[%c0_16, %c0_17] : memref<16x1xf32, #tpu.memory_space<vmem>>, vector<16x1xf32>
    %22 = arith.mulf %17, %21 : vector<16x1xf32>
    %cst_18 = arith.constant dense<0.000000e+00> : vector<16xf32>
    %23 = vector.multi_reduction <add>, %20, %cst_18 [1] : vector<16x8xf32> to vector<16xf32>
    %24 = vector.shape_cast %23 : vector<16xf32> to vector<16x1xf32>
    %25 = arith.addf %22, %24 : vector<16x1xf32>
    %c0_19 = arith.constant 0 : index
    %c0_20 = arith.constant 0 : index
    %26 = vector.load %arg9[%c0_19, %c0_20] : memref<16x1xf32, #tpu.memory_space<vmem>>, vector<16x1xf32>
    tpu.vector_store %arg9[%c0_19, %c0_20], %25 {strides = array<i32>} : memref<16x1xf32, #tpu.memory_space<vmem>>, vector<16x1xf32>,
    %c0_21 = arith.constant 0 : index
    %c0_22 = arith.constant 0 : index
    %27 = vector.load %arg10[%c0_21, %c0_22] : memref<16x16xf32, #tpu.memory_space<vmem>>, vector<16x16xf32>
    %28 = vector.broadcast %17 : vector<16x1xf32> to vector<16x16xf32>
    %29 = arith.mulf %28, %27 : vector<16x16xf32>
    %cst_23 = arith.constant dense<0.000000e+00> : vector<16x16xf32>
    %30 = tpu.matmul %20, %5, %cst_23 {dimension_numbers = #tpu.dot_dimension_numbers<[1], [0], [0], [1], [0, 0, 1, 1], [], []>} : vector<16x8xf32>, vector<8x16xf32>, vector<16x16xf32> -> vector<16x16xf32>
    %31 = arith.addf %29, %30 : vector<16x16xf32>
    %c0_24 = arith.constant 0 : index
    %c0_25 = arith.constant 0 : index
    %32 = vector.load %arg10[%c0_24, %c0_25] : memref<16x16xf32, #tpu.memory_space<vmem>>, vector<16x16xf32>
    tpu.vector_store %arg10[%c0_24, %c0_25], %31 {strides = array<i32>} : memref<16x16xf32, #tpu.memory_space<vmem>>, vector<16x16xf32>,
    %c0_26 = arith.constant 0 : index
    %c0_27 = arith.constant 0 : index
    %33 = vector.load %arg8[%c0_26, %c0_27] : memref<16x1xf32, #tpu.memory_space<vmem>>, vector<16x1xf32>
    tpu.vector_store %arg8[%c0_26, %c0_27], %15 {strides = array<i32>} : memref<16x1xf32, #tpu.memory_space<vmem>>, vector<16x1xf32>,
    %c3_i32 = arith.constant 3 : i32
    %34 = arith.cmpi eq, %arg3, %c3_i32 : i32
    %35 = arith.extui %34 : i1 to i32
    %c0_i32_28 = arith.constant 0 : i32
    %36 = arith.cmpi ne, %35, %c0_i32_28 : i32
    scf.if %36 {
      %c0_29 = arith.constant 0 : index
      %c0_30 = arith.constant 0 : index
      %37 = vector.load %arg9[%c0_29, %c0_30] : memref<16x1xf32, #tpu.memory_space<vmem>>, vector<16x1xf32>
      %38 = tpu.reciprocal %37 {approx = true} : vector<16x1xf32> -> vector<16x1xf32>
      %c0_31 = arith.constant 0 : index
      %c0_32 = arith.constant 0 : index
      %39 = vector.load %arg10[%c0_31, %c0_32] : memref<16x16xf32, #tpu.memory_space<vmem>>, vector<16x16xf32>
      %40 = vector.broadcast %38 : vector<16x1xf32> to vector<16x16xf32>
      %41 = arith.mulf %39, %40 : vector<16x16xf32>
      %c0_33 = arith.constant 0 : index
      %c0_34 = arith.constant 0 : index
      %c0_35 = arith.constant 0 : index
      %c0_36 = arith.constant 0 : index
      %42 = vector.load %arg7[%c0_33, %c0_34, %c0_35, %c0_36] : memref<1x1x16x16xf32, #tpu.memory_space<vmem>>, vector<1x1x16x16xf32>
      %43 = vector.shape_cast %42 : vector<1x1x16x16xf32> to vector<16x16xf32>
      %44 = vector.shape_cast %41 : vector<16x16xf32> to vector<1x1x16x16xf32>
      tpu.vector_store %arg7[%c0_33, %c0_34, %c0_35, %c0_36], %44 {strides = array<i32>} : memref<1x1x16x16xf32, #tpu.memory_space<vmem>>, vector<1x1x16x16xf32>,
    } else {
    }
    return
  }
  func.func @transform_0(%arg0: i32, %arg1: i32, %arg2: i32, %arg3: i32) -> (i32, i32, i32, i32) {
    %c0_i32 = arith.constant 0 : i32
    %c0_i32_0 = arith.constant 0 : i32
    return %arg0, %arg1, %arg2, %c0_i32 : i32, i32, i32, i32
  }
  func.func @transform_1(%arg0: i32, %arg1: i32, %arg2: i32, %arg3: i32) -> (i32, i32, i32, i32) {
    %c0_i32 = arith.constant 0 : i32
    %c0_i32_0 = arith.constant 0 : i32
    return %arg0, %arg1, %arg3, %c0_i32 : i32, i32, i32, i32
  }
  func.func @transform_2(%arg0: i32, %arg1: i32, %arg2: i32, %arg3: i32) -> (i32, i32, i32, i32) {
    %c0_i32 = arith.constant 0 : i32
    %c0_i32_0 = arith.constant 0 : i32
    return %arg0, %arg1, %arg3, %c0_i32 : i32, i32, i32, i32
  }
  func.func @transform_3(%arg0: i32, %arg1: i32, %arg2: i32, %arg3: i32) -> (i32, i32, i32, i32) {
    %c0_i32 = arith.constant 0 : i32
    %c0_i32_0 = arith.constant 0 : i32
    return %arg0, %arg1, %arg2, %c0_i32 : i32, i32, i32, i32
  }
}

module attributes {stable_mosaic.version = 11 : i64} {
  func.func @_attn_twicing_kernel(%arg0: i32, %arg1: i32, %arg2: i32, %arg3: i32, %arg4: memref<1x1x16x16xf32, #tpu.memory_space<vmem>>, %arg5: memref<1x1x8x16xf32, #tpu.memory_space<vmem>>, %arg6: memref<1x1x8x16xf32, #tpu.memory_space<vmem>>, %arg7: memref<1x1x8x16xf32, #tpu.memory_space<vmem>>, %arg8: memref<1x1x16x16xf32, #tpu.memory_space<vmem>>, %arg9: memref<16x1xf32, #tpu.memory_space<vmem>>, %arg10: memref<16x1xf32, #tpu.memory_space<vmem>>, %arg11: memref<16x16xf32, #tpu.memory_space<vmem>>) attributes {dimension_semantics = [#tpu.dimension_semantics<parallel>, #tpu.dimension_semantics<parallel>, #tpu.dimension_semantics<parallel>, #tpu.dimension_semantics<arbitrary>], iteration_bounds = array<i64: 2, 4, 2, 4>, scalar_prefetch = 0 : i64, scratch_operands = 3 : i64, tpu.core_type = #tpu.core_type<tc>, window_params = [{transform_indices = @transform_0, window_bounds = array<i64: 1, 1, 16, 16>}, {transform_indices = @transform_1, window_bounds = array<i64: 1, 1, 8, 16>}, {transform_indices = @transform_2, window_bounds = array<i64: 1, 1, 8, 16>}, {transform_indices = @transform_3, window_bounds = array<i64: 1, 1, 8, 16>}, {transform_indices = @transform_4, window_bounds = array<i64: 1, 1, 16, 16>}]} {
    %c0 = arith.constant 0 : index
    %c0_0 = arith.constant 0 : index
    %c0_1 = arith.constant 0 : index
    %c0_2 = arith.constant 0 : index
    %0 = vector.load %arg6[%c0, %c0_0, %c0_1, %c0_2] : memref<1x1x8x16xf32, #tpu.memory_space<vmem>>, vector<1x1x8x16xf32>
    %1 = vector.shape_cast %0 : vector<1x1x8x16xf32> to vector<8x16xf32>
    %cst = arith.constant 2.000000e+00 : f32
    %2 = vector.broadcast %cst : f32 to vector<8x16xf32>
    %3 = arith.mulf %2, %1 : vector<8x16xf32>
    %c0_3 = arith.constant 0 : index
    %c0_4 = arith.constant 0 : index
    %c0_5 = arith.constant 0 : index
    %c0_6 = arith.constant 0 : index
    %4 = vector.load %arg7[%c0_3, %c0_4, %c0_5, %c0_6] : memref<1x1x8x16xf32, #tpu.memory_space<vmem>>, vector<1x1x8x16xf32>
    %5 = vector.shape_cast %4 : vector<1x1x8x16xf32> to vector<8x16xf32>
    %6 = arith.subf %3, %5 : vector<8x16xf32>
    %c0_7 = arith.constant 0 : index
    %c0_8 = arith.constant 0 : index
    %c0_9 = arith.constant 0 : index
    %c0_10 = arith.constant 0 : index
    %7 = vector.load %arg4[%c0_7, %c0_8, %c0_9, %c0_10] : memref<1x1x16x16xf32, #tpu.memory_space<vmem>>, vector<1x1x16x16xf32>
    %8 = vector.shape_cast %7 : vector<1x1x16x16xf32> to vector<16x16xf32>
    %c0_11 = arith.constant 0 : index
    %c0_12 = arith.constant 0 : index
    %c0_13 = arith.constant 0 : index
    %c0_14 = arith.constant 0 : index
    %9 = vector.load %arg5[%c0_11, %c0_12, %c0_13, %c0_14] : memref<1x1x8x16xf32, #tpu.memory_space<vmem>>, vector<1x1x8x16xf32>
    %10 = vector.shape_cast %9 : vector<1x1x8x16xf32> to vector<8x16xf32>
    %c0_i32 = arith.constant 0 : i32
    %11 = arith.cmpi eq, %arg3, %c0_i32 : i32
    %12 = arith.extui %11 : i1 to i32
    %c0_i32_15 = arith.constant 0 : i32
    %13 = arith.cmpi ne, %12, %c0_i32_15 : i32
    scf.if %13 {
      %cst_34 = arith.constant 0xFF800000 : f32
      %42 = vector.broadcast %cst_34 : f32 to vector<16x1xf32>
      %c0_35 = arith.constant 0 : index
      %c0_36 = arith.constant 0 : index
      %43 = vector.load %arg9[%c0_35, %c0_36] : memref<16x1xf32, #tpu.memory_space<vmem>>, vector<16x1xf32>
      tpu.vector_store %arg9[%c0_35, %c0_36], %42 {strides = array<i32>} : memref<16x1xf32, #tpu.memory_space<vmem>>, vector<16x1xf32>,
      %cst_37 = arith.constant 0.000000e+00 : f32
      %44 = vector.broadcast %cst_37 : f32 to vector<16x1xf32>
      %c0_38 = arith.constant 0 : index
      %c0_39 = arith.constant 0 : index
      %45 = vector.load %arg10[%c0_38, %c0_39] : memref<16x1xf32, #tpu.memory_space<vmem>>, vector<16x1xf32>
      tpu.vector_store %arg10[%c0_38, %c0_39], %44 {strides = array<i32>} : memref<16x1xf32, #tpu.memory_space<vmem>>, vector<16x1xf32>,
      %cst_40 = arith.constant 0.000000e+00 : f32
      %46 = vector.broadcast %cst_40 : f32 to vector<16x16xf32>
      %c0_41 = arith.constant 0 : index
      %c0_42 = arith.constant 0 : index
      %47 = vector.load %arg11[%c0_41, %c0_42] : memref<16x16xf32, #tpu.memory_space<vmem>>, vector<16x16xf32>
      tpu.vector_store %arg11[%c0_41, %c0_42], %46 {strides = array<i32>} : memref<16x16xf32, #tpu.memory_space<vmem>>, vector<16x16xf32>,
    } else {
    }
    %cst_16 = arith.constant dense<0.000000e+00> : vector<16x8xf32>
    %14 = tpu.matmul %8, %10, %cst_16 {dimension_numbers = #tpu.dot_dimension_numbers<[1], [1], [0], [0], [0, 0, 1, 0], [], []>} : vector<16x16xf32>, vector<8x16xf32>, vector<16x8xf32> -> vector<16x8xf32>
    %cst_17 = arith.constant 2.500000e-01 : f32
    %15 = vector.broadcast %cst_17 : f32 to vector<16x8xf32>
    %16 = arith.mulf %14, %15 : vector<16x8xf32>
    %c0_18 = arith.constant 0 : index
    %c0_19 = arith.constant 0 : index
    %17 = vector.load %arg9[%c0_18, %c0_19] : memref<16x1xf32, #tpu.memory_space<vmem>>, vector<16x1xf32>
    %cst_20 = arith.constant dense<0xFF800000> : vector<16xf32>
    %18 = vector.multi_reduction <maximumf>, %16, %cst_20 [1] : vector<16x8xf32> to vector<16xf32>
    %19 = vector.shape_cast %18 : vector<16xf32> to vector<16x1xf32>
    %20 = arith.maximumf %17, %19 : vector<16x1xf32>
    %21 = arith.subf %17, %20 : vector<16x1xf32>
    %22 = math.exp %21 : vector<16x1xf32>
    %23 = vector.broadcast %20 : vector<16x1xf32> to vector<16x8xf32>
    %24 = arith.subf %16, %23 : vector<16x8xf32>
    %25 = math.exp %24 : vector<16x8xf32>
    %c0_21 = arith.constant 0 : index
    %c0_22 = arith.constant 0 : index
    %26 = vector.load %arg10[%c0_21, %c0_22] : memref<16x1xf32, #tpu.memory_space<vmem>>, vector<16x1xf32>
    %27 = arith.mulf %22, %26 : vector<16x1xf32>
    %cst_23 = arith.constant dense<0.000000e+00> : vector<16xf32>
    %28 = vector.multi_reduction <add>, %25, %cst_23 [1] : vector<16x8xf32> to vector<16xf32>
    %29 = vector.shape_cast %28 : vector<16xf32> to vector<16x1xf32>
    %30 = arith.addf %27, %29 : vector<16x1xf32>
    %c0_24 = arith.constant 0 : index
    %c0_25 = arith.constant 0 : index
    %31 = vector.load %arg10[%c0_24, %c0_25] : memref<16x1xf32, #tpu.memory_space<vmem>>, vector<16x1xf32>
    tpu.vector_store %arg10[%c0_24, %c0_25], %30 {strides = array<i32>} : memref<16x1xf32, #tpu.memory_space<vmem>>, vector<16x1xf32>,
    %c0_26 = arith.constant 0 : index
    %c0_27 = arith.constant 0 : index
    %32 = vector.load %arg11[%c0_26, %c0_27] : memref<16x16xf32, #tpu.memory_space<vmem>>, vector<16x16xf32>
    %33 = vector.broadcast %22 : vector<16x1xf32> to vector<16x16xf32>
    %34 = arith.mulf %33, %32 : vector<16x16xf32>
    %cst_28 = arith.constant dense<0.000000e+00> : vector<16x16xf32>
    %35 = tpu.matmul %25, %6, %cst_28 {dimension_numbers = #tpu.dot_dimension_numbers<[1], [0], [0], [1], [0, 0, 1, 1], [], []>} : vector<16x8xf32>, vector<8x16xf32>, vector<16x16xf32> -> vector<16x16xf32>
    %36 = arith.addf %34, %35 : vector<16x16xf32>
    %c0_29 = arith.constant 0 : index
    %c0_30 = arith.constant 0 : index
    %37 = vector.load %arg11[%c0_29, %c0_30] : memref<16x16xf32, #tpu.memory_space<vmem>>, vector<16x16xf32>
    tpu.vector_store %arg11[%c0_29, %c0_30], %36 {strides = array<i32>} : memref<16x16xf32, #tpu.memory_space<vmem>>, vector<16x16xf32>,
    %c0_31 = arith.constant 0 : index
    %c0_32 = arith.constant 0 : index
    %38 = vector.load %arg9[%c0_31, %c0_32] : memref<16x1xf32, #tpu.memory_space<vmem>>, vector<16x1xf32>
    tpu.vector_store %arg9[%c0_31, %c0_32], %20 {strides = array<i32>} : memref<16x1xf32, #tpu.memory_space<vmem>>, vector<16x1xf32>,
    %c3_i32 = arith.constant 3 : i32
    %39 = arith.cmpi eq, %arg3, %c3_i32 : i32
    %40 = arith.extui %39 : i1 to i32
    %c0_i32_33 = arith.constant 0 : i32
    %41 = arith.cmpi ne, %40, %c0_i32_33 : i32
    scf.if %41 {
      %c0_34 = arith.constant 0 : index
      %c0_35 = arith.constant 0 : index
      %42 = vector.load %arg10[%c0_34, %c0_35] : memref<16x1xf32, #tpu.memory_space<vmem>>, vector<16x1xf32>
      %43 = tpu.reciprocal %42 {approx = true} : vector<16x1xf32> -> vector<16x1xf32>
      %c0_36 = arith.constant 0 : index
      %c0_37 = arith.constant 0 : index
      %44 = vector.load %arg11[%c0_36, %c0_37] : memref<16x16xf32, #tpu.memory_space<vmem>>, vector<16x16xf32>
      %45 = vector.broadcast %43 : vector<16x1xf32> to vector<16x16xf32>
      %46 = arith.mulf %44, %45 : vector<16x16xf32>
      %c0_38 = arith.constant 0 : index
      %c0_39 = arith.constant 0 : index
      %c0_40 = arith.constant 0 : index
      %c0_41 = arith.constant 0 : index
      %47 = vector.load %arg8[%c0_38, %c0_39, %c0_40, %c0_41] : memref<1x1x16x16xf32, #tpu.memory_space<vmem>>, vector<1x1x16x16xf32>
      %48 = vector.shape_cast %47 : vector<1x1x16x16xf32> to vector<16x16xf32>
      %49 = vector.shape_cast %46 : vector<16x16xf32> to vector<1x1x16x16xf32>
      tpu.vector_store %arg8[%c0_38, %c0_39, %c0_40, %c0_41], %49 {strides = array<i32>} : memref<1x1x16x16xf32, #tpu.memory_space<vmem>>, vector<1x1x16x16xf32>,
    } else {
    }
    return
  }
  func.func @transform_0(%arg0: i32, %arg1: i32, %arg2: i32, %arg3: i32) -> (i32, i32, i32, i32) {
    %c0_i32 = arith.constant 0 : i32
    %c0_i32_0 = arith.constant 0 : i32
    return %arg0, %arg1, %arg2, %c0_i32 : i32, i32, i32, i32
  }
  func.func @transform_1(%arg0: i32, %arg1: i32, %arg2: i32, %arg3: i32) -> (i32, i32, i32, i32) {
    %c0_i32 = arith.constant 0 : i32
    %c0_i32_0 = arith.constant 0 : i32
    return %arg0, %arg1, %arg3, %c0_i32 : i32, i32, i32, i32
  }
  func.func @transform_2(%arg0: i32, %arg1: i32, %arg2: i32, %arg3: i32) -> (i32, i32, i32, i32) {
    %c0_i32 = arith.constant 0 : i32
    %c0_i32_0 = arith.constant 0 : i32
    return %arg0, %arg1, %arg3, %c0_i32 : i32, i32, i32, i32
  }
  func.func @transform_3(%arg0: i32, %arg1: i32, %arg2: i32, %arg3: i32) -> (i32, i32, i32, i32) {
    %c0_i32 = arith.constant 0 : i32
    %c0_i32_0 = arith.constant 0 : i32
    return %arg0, %arg1, %arg3, %c0_i32 : i32, i32, i32, i32
  }
  func.func @transform_4(%arg0: i32, %arg1: i32, %arg2: i32, %arg3: i32) -> (i32, i32, i32, i32) {
    %c0_i32 = arith.constant 0 : i32
    %c0_i32_0 = arith.constant 0 : i32
    return %arg0, %arg1, %arg2, %c0_i32 : i32, i32, i32, i32
  }
}

module attributes {stable_mosaic.version = 11 : i64} {
  func.func @_linear_bias_kernel(%arg0: i32, %arg1: memref<64x64xf32, #tpu.memory_space<vmem>>, %arg2: memref<64x64xf32, #tpu.memory_space<vmem>>, %arg3: memref<1x64xf32, #tpu.memory_space<vmem>>, %arg4: memref<64x64xf32, #tpu.memory_space<vmem>>) attributes {dimension_semantics = [#tpu.dimension_semantics<parallel>], iteration_bounds = array<i64: 1>, scalar_prefetch = 0 : i64, scratch_operands = 0 : i64, tpu.core_type = #tpu.core_type<tc>, window_params = [{transform_indices = @transform_0, window_bounds = array<i64: 64, 64>}, {pipeline_mode = #tpu.pipeline_mode<synchronous>, transform_indices = @transform_1, window_bounds = array<i64: 64, 64>}, {pipeline_mode = #tpu.pipeline_mode<synchronous>, transform_indices = @transform_2, window_bounds = array<i64: 1, 64>}, {transform_indices = @transform_3, window_bounds = array<i64: 64, 64>}]} {
    %c0 = arith.constant 0 : index
    %c0_0 = arith.constant 0 : index
    %0 = vector.load %arg1[%c0, %c0_0] : memref<64x64xf32, #tpu.memory_space<vmem>>, vector<64x64xf32>
    %c0_1 = arith.constant 0 : index
    %c0_2 = arith.constant 0 : index
    %1 = vector.load %arg2[%c0_1, %c0_2] : memref<64x64xf32, #tpu.memory_space<vmem>>, vector<64x64xf32>
    %cst = arith.constant dense<0.000000e+00> : vector<64x64xf32>
    %2 = tpu.matmul %0, %1, %cst {dimension_numbers = #tpu.dot_dimension_numbers<[1], [1], [0], [0], [0, 0, 1, 0], [], []>} : vector<64x64xf32>, vector<64x64xf32>, vector<64x64xf32> -> vector<64x64xf32>
    %c0_3 = arith.constant 0 : index
    %c0_4 = arith.constant 0 : index
    %3 = vector.load %arg3[%c0_3, %c0_4] : memref<1x64xf32, #tpu.memory_space<vmem>>, vector<1x64xf32>
    %4 = vector.broadcast %3 : vector<1x64xf32> to vector<64x64xf32>
    %5 = arith.addf %2, %4 : vector<64x64xf32>
    %c0_5 = arith.constant 0 : index
    %c0_6 = arith.constant 0 : index
    %6 = vector.load %arg4[%c0_5, %c0_6] : memref<64x64xf32, #tpu.memory_space<vmem>>, vector<64x64xf32>
    tpu.vector_store %arg4[%c0_5, %c0_6], %5 {strides = array<i32>} : memref<64x64xf32, #tpu.memory_space<vmem>>, vector<64x64xf32>,
    return
  }
  func.func @transform_0(%arg0: i32) -> (i32, i32) {
    %c0_i32 = arith.constant 0 : i32
    %c0_i32_0 = arith.constant 0 : i32
    return %arg0, %c0_i32 : i32, i32
  }
  func.func @transform_1(%arg0: i32) -> (i32, i32) {
    %c0_i32 = arith.constant 0 : i32
    %c0_i32_0 = arith.constant 0 : i32
    %c0_i32_1 = arith.constant 0 : i32
    return %c0_i32, %c0_i32_0 : i32, i32
  }
  func.func @transform_2(%arg0: i32) -> (i32, i32) {
    %c0_i32 = arith.constant 0 : i32
    %c0_i32_0 = arith.constant 0 : i32
    %c0_i32_1 = arith.constant 0 : i32
    return %c0_i32, %c0_i32_0 : i32, i32
  }
  func.func @transform_3(%arg0: i32) -> (i32, i32) {
    %c0_i32 = arith.constant 0 : i32
    %c0_i32_0 = arith.constant 0 : i32
    return %arg0, %c0_i32 : i32, i32
  }
}

</mosaic_0001>

<bundles_post_ra>
// kernel: sharp_attention_forward.4
= control target key start
LH: loop header
LB: loop body
LE: loop exit
PB: predicated region body
PF: predicated region fallthrough
CT: control target
= control target key end

     0   :  { %vm43_vm0 = vcmask 523264   ;;  %v379_v0 = vmov 0.0|0.0   ;;  %v380_v5 = vmov 0.0   ;;  %s642_s1 = inlined_call_operand.vmem [shape: f32[192,64], index: 1, kind: input, shape index: {}]   ;;  %s643_s0 = inlined_call_operand.vmem [shape: f32[64,64], index: 0, kind: input, shape index: {}]   ;;  %s644_s2 = inlined_call_operand.vmem [shape: f32[64,192], index: 2, kind: output, shape index: {}]  }
   0x1   :  { %305 = vmatprep.subr.bf16.mxu0 %v379_v0  ;;  %353 = vmatprep.subr.bf16.mxu1 %v379_v0  ;;  %v19_v1 = vld [vmem:[%s642_s1] sm:$0xff]  ;;  %v20_v2 = vld [vmem:[%s642_s1 + $0x8] sm:$0xff]  ;;  %vm406_vm1 = vmpackc.low %vm43_vm0, %vm43_vm0 }
   0x2   :  { %v306_v4 = vpack.c.bf16 %v20_v2, %v19_v1  ;;  %204 = vmatprep.mubr.f32.mxu0 %v380_v5  ;;  %228 = vmatprep.mubr.f32.mxu1 %v380_v5  ;;  %v21_v6 = vld [vmem:[%s642_s1 + $0x10] sm:$0xff]  ;;  %v22_v7 = vld [vmem:[%s642_s1 + $0x18] sm:$0xff]  ;;  %v23_v9 = vld [vmem:[%s642_s1 + $0x20] sm:$0xff] }
   0x3   :  { %v310_v8 = vpack.c.bf16 %v22_v7, %v21_v6  ;;  %v24_v10 = vld [vmem:[%s642_s1 + $0x28] sm:$0xff]  ;;  %v25_v12 = vld [vmem:[%s642_s1 + $0x30] sm:$0xff]  ;;  %v26_v13 = vld [vmem:[%s642_s1 + $0x38] sm:$0xff] }
   0x4   :  { %308 = vmatpush1.bf16.xpose.msk.msra.mxu0 %vm406_vm1, %v306_v4  ;;  %365 = vmatpush1.bf16.xpose.msk.msra.mxu1 %vm406_vm1, %v306_v4  ;;  %v314_v11 = vpack.c.bf16 %v24_v10, %v23_v9  ;;  %v318_v14 = vpack.c.bf16 %v26_v13, %v25_v12  ;;  %v27_v15 = vld [vmem:[%s642_s1 + $0x40] sm:$0xff]  ;;  %v28_v16 = vld [vmem:[%s642_s1 + $0x48] sm:$0xff]  ;;  %v29_v18 = vld [vmem:[%s642_s1 + $0x50] sm:$0xff] }
   0x5   :  { %309 = vmatprep.subr.bf16.mxu0 %v379_v0  ;;  %354 = vmatprep.subr.bf16.mxu1 %v379_v0  ;;  %v322_v17 = vpack.c.bf16 %v28_v16, %v27_v15  ;;  %v30_v19 = vld [vmem:[%s642_s1 + $0x58] sm:$0xff]  ;;  %v31_v21 = vld [vmem:[%s642_s1 + $0x60] sm:$0xff]  ;;  %v32_v22 = vld [vmem:[%s642_s1 + $0x68] sm:$0xff] }
   0x6   :  { %v326_v20 = vpack.c.bf16 %v30_v19, %v29_v18  ;;  %v330_v23 = vpack.c.bf16 %v32_v22, %v31_v21  ;;  %v33_v24 = vld [vmem:[%s642_s1 + $0x70] sm:$0xff]  ;;  %v34_v25 = vld [vmem:[%s642_s1 + $0x78] sm:$0xff]  ;;  %v35_v27 = vld [vmem:[%s642_s1 + $0x80] sm:$0xff] }
   0x7   :  { %v334_v26 = vpack.c.bf16 %v34_v25, %v33_v24  ;;  %v36_v28 = vld [vmem:[%s642_s1 + $0x88] sm:$0xff]  ;;  %v37_v30 = vld [vmem:[%s642_s1 + $0x90] sm:$0xff]  ;;  %v38_v31 = vld [vmem:[%s642_s1 + $0x98] sm:$0xff] }
   0x8   :  { %v338_v29 = vpack.c.bf16 %v36_v28, %v35_v27  ;;  %v342_v32 = vpack.c.bf16 %v38_v31, %v37_v30  ;;  %v39_v33 = vld [vmem:[%s642_s1 + $0xa0] sm:$0xff]  ;;  %v40_v34 = vld [vmem:[%s642_s1 + $0xa8] sm:$0xff]  ;;  %v41_v36 = vld [vmem:[%s642_s1 + $0xb0] sm:$0xff] }
   0x9   :  { %v346_v35 = vpack.c.bf16 %v40_v34, %v39_v33  ;;  %v42_v37 = vld [vmem:[%s642_s1 + $0xb8] sm:$0xff]  ;;  %v11_v39 = vld [vmem:[%s643_s0] sm:$0xff]  ;;  %v12_v41 = vld [vmem:[%s643_s0 + $0x8] sm:$0xff] }
   0xa   :  { %v350_v38 = vpack.c.bf16 %v42_v37, %v41_v36  ;;  %v15_v40 = vld [vmem:[%s643_s0 + $0x20] sm:$0xff]  ;;  %v16_v42 = vld [vmem:[%s643_s0 + $0x28] sm:$0xff]  ;;  %v13_v43 = vld [vmem:[%s643_s0 + $0x10] sm:$0xff] }
   0xb   :  { %v17_v44 = vld [vmem:[%s643_s0 + $0x30] sm:$0xff]  ;;  %v14_v45 = vld [vmem:[%s643_s0 + $0x18] sm:$0xff] }
   0xc   :  { %312 = vmatpush1.bf16.xpose.msk.msra.mxu0 %vm406_vm1, %v310_v8  ;;  %366 = vmatpush1.bf16.xpose.msk.msra.mxu1 %vm406_vm1, %v310_v8  ;;  %v18_v46 = vld [vmem:[%s643_s0 + $0x38] sm:$0xff] }
   0xd   :  { %313 = vmatprep.subr.bf16.mxu0 %v379_v0  ;;  %355 = vmatprep.subr.bf16.mxu1 %v379_v0 }
  0x14   :  { %316 = vmatpush1.bf16.xpose.msk.msra.mxu0 %vm406_vm1, %v314_v11  ;;  %367 = vmatpush1.bf16.xpose.msk.msra.mxu1 %vm406_vm1, %v314_v11 }
  0x15   :  { %317 = vmatprep.subr.bf16.mxu0 %v379_v0  ;;  %356 = vmatprep.subr.bf16.mxu1 %v379_v0 }
  0x1c   :  { %320 = vmatpush1.bf16.xpose.msk.msra.mxu0 %vm406_vm1, %v318_v14  ;;  %368 = vmatpush1.bf16.xpose.msk.msra.mxu1 %vm406_vm1, %v318_v14 }
  0x1d   :  { %321 = vmatprep.subr.bf16.mxu0 %v379_v0  ;;  %357 = vmatprep.subr.bf16.mxu1 %v379_v0 }
  0x24   :  { %324 = vmatpush1.bf16.xpose.msk.msra.mxu0 %vm406_vm1, %v322_v17  ;;  %369 = vmatpush1.bf16.xpose.msk.msra.mxu1 %vm406_vm1, %v322_v17 }
  0x25   :  { %325 = vmatprep.subr.bf16.mxu0 %v379_v0  ;;  %358 = vmatprep.subr.bf16.mxu1 %v379_v0 }
  0x2c   :  { %328 = vmatpush1.bf16.xpose.msk.msra.mxu0 %vm406_vm1, %v326_v20  ;;  %370 = vmatpush1.bf16.xpose.msk.msra.mxu1 %vm406_vm1, %v326_v20 }
  0x2d   :  { %329 = vmatprep.subr.bf16.mxu0 %v379_v0  ;;  %359 = vmatprep.subr.bf16.mxu1 %v379_v0 }
  0x34   :  { %332 = vmatpush1.bf16.xpose.msk.msra.mxu0 %vm406_vm1, %v330_v23  ;;  %371 = vmatpush1.bf16.xpose.msk.msra.mxu1 %vm406_vm1, %v330_v23 }
  0x35   :  { %333 = vmatprep.subr.bf16.mxu0 %v379_v0  ;;  %360 = vmatprep.subr.bf16.mxu1 %v379_v0 }
  0x3c   :  { %336 = vmatpush1.bf16.xpose.msk.msra.mxu0 %vm406_vm1, %v334_v26  ;;  %372 = vmatpush1.bf16.xpose.msk.msra.mxu1 %vm406_vm1, %v334_v26 }
  0x3d   :  { %337 = vmatprep.subr.bf16.mxu0 %v379_v0  ;;  %361 = vmatprep.subr.bf16.mxu1 %v379_v0 }
  0x44   :  { %340 = vmatpush1.bf16.xpose.msk.msra.mxu0 %vm406_vm1, %v338_v29  ;;  %373 = vmatpush1.bf16.xpose.msk.msra.mxu1 %vm406_vm1, %v338_v29 }
  0x45   :  { %341 = vmatprep.subr.bf16.mxu0 %v379_v0  ;;  %362 = vmatprep.subr.bf16.mxu1 %v379_v0 }
  0x4c   :  { %344 = vmatpush1.bf16.xpose.msk.msra.mxu0 %vm406_vm1, %v342_v32  ;;  %374 = vmatpush1.bf16.xpose.msk.msra.mxu1 %vm406_vm1, %v342_v32 }
  0x4d   :  { %345 = vmatprep.subr.bf16.mxu0 %v379_v0  ;;  %363 = vmatprep.subr.bf16.mxu1 %v379_v0 }
  0x54   :  { %348 = vmatpush1.bf16.xpose.msk.msra.mxu0 %vm406_vm1, %v346_v35  ;;  %375 = vmatpush1.bf16.xpose.msk.msra.mxu1 %vm406_vm1, %v346_v35 }
  0x55   :  { %349 = vmatprep.subr.bf16.mxu0 %v379_v0  ;;  %364 = vmatprep.subr.bf16.mxu1 %v379_v0 }
  0x5c   :  { %352 = vmatpush1.bf16.xpose.msk.msra.mxu0 %vm406_vm1, %v350_v38  ;;  %376 = vmatpush1.bf16.xpose.msk.msra.mxu1 %vm406_vm1, %v350_v38 }
  0x63   :  { %297 = vmatmul.mubr.msk.f32.vlgmr.msra.gmra.mrb[0].mxu0 %vm43_vm0, %v11_v39  ;;  %301 = vmatmul.mubr.msk.f32.vlgmr.msra.gmra.mrb[0].mxu1 %vm43_vm0, %v15_v40 }
  0x64   :  { %210 = vmatprep.mubr.f32.mxu0 %v380_v5  ;;  %234 = vmatprep.mubr.f32.mxu1 %v380_v5 }
  0x67   :  { %298 = vmatmul.mubr.msk.f32.gmra.mrb[2].mxu0 %vm43_vm0, %v12_v41  ;;  %302 = vmatmul.mubr.msk.f32.gmra.mrb[2].mxu1 %vm43_vm0, %v16_v42 }
  0x68   :  { %216 = vmatprep.mubr.f32.mxu0 %v380_v5  ;;  %240 = vmatprep.mubr.f32.mxu1 %v380_v5 }
  0x6b   :  { %299 = vmatmul.mubr.msk.f32.gmra.mrb[4].mxu0 %vm43_vm0, %v13_v43  ;;  %303 = vmatmul.mubr.msk.f32.gmra.mrb[4].mxu1 %vm43_vm0, %v17_v44 }
  0x6c   :  { %222 = vmatprep.mubr.f32.mxu0 %v380_v5  ;;  %246 = vmatprep.mubr.f32.mxu1 %v380_v5 }
  0x6f   :  { %300 = vmatmul.mubr.msk.f32.gmra.mrb[6].mxu0 %vm43_vm0, %v14_v45  ;;  %304 = vmatmul.mubr.msk.f32.gmra.mrb[6].mxu1 %vm43_vm0, %v18_v46 }
 0x136   :  { %v206_v47 = vpop.f32.mrb[0].mxu0  ;;  %v230_v48 = vpop.f32.mrb[0].mxu1 }
 0x137   :  { %253 = vst [vmem:[%s644_s2] sm:$0xff] %v206_v47  ;;  %261 = vst [vmem:[%s644_s2 + $0x40] sm:$0xff] %v230_v48  ;;  %v208_v49 = vpop.f32.mrb[1].mxu0  ;;  %v232_v50 = vpop.f32.mrb[1].mxu1 }
 0x138   :  { %254 = vst.msk [vmem:[%s644_s2 + $0x8] sm:$0xff] %vm43_vm0, %v208_v49  ;;  %262 = vst.msk [vmem:[%s644_s2 + $0x48] sm:$0xff] %vm43_vm0, %v232_v50 }
 0x13a   :  { %v212_v51 = vpop.f32.mrb[2].mxu0  ;;  %v236_v52 = vpop.f32.mrb[2].mxu1 }
 0x13b   :  { %255 = vst [vmem:[%s644_s2 + $0x10] sm:$0xff] %v212_v51  ;;  %263 = vst [vmem:[%s644_s2 + $0x50] sm:$0xff] %v236_v52  ;;  %v214_v53 = vpop.f32.mrb[3].mxu0  ;;  %v238_v54 = vpop.f32.mrb[3].mxu1 }
 0x13c   :  { %256 = vst.msk [vmem:[%s644_s2 + $0x18] sm:$0xff] %vm43_vm0, %v214_v53  ;;  %264 = vst.msk [vmem:[%s644_s2 + $0x58] sm:$0xff] %vm43_vm0, %v238_v54 }
 0x13e   :  { %v218_v55 = vpop.f32.mrb[4].mxu0  ;;  %v242_v56 = vpop.f32.mrb[4].mxu1 }
 0x13f   :  { %257 = vst [vmem:[%s644_s2 + $0x20] sm:$0xff] %v218_v55  ;;  %265 = vst [vmem:[%s644_s2 + $0x60] sm:$0xff] %v242_v56  ;;  %v220_v57 = vpop.f32.mrb[5].mxu0  ;;  %v244_v58 = vpop.f32.mrb[5].mxu1 }
 0x140   :  { %258 = vst.msk [vmem:[%s644_s2 + $0x28] sm:$0xff] %vm43_vm0, %v220_v57  ;;  %266 = vst.msk [vmem:[%s644_s2 + $0x68] sm:$0xff] %vm43_vm0, %v244_v58 }
 0x142   :  { %v224_v59 = vpop.f32.mrb[6].mxu0  ;;  %v248_v60 = vpop.f32.mrb[6].mxu1 }
 0x143   :  { %259 = vst [vmem:[%s644_s2 + $0x30] sm:$0xff] %v224_v59  ;;  %267 = vst [vmem:[%s644_s2 + $0x70] sm:$0xff] %v248_v60  ;;  %v226_v61 = vpop.f32.mrb[7].mxu0  ;;  %v250_v62 = vpop.f32.mrb[7].mxu1 }
 0x144   :  { %260 = vst.msk [vmem:[%s644_s2 + $0x38] sm:$0xff] %vm43_vm0, %v226_v61  ;;  %268 = vst.msk [vmem:[%s644_s2 + $0x78] sm:$0xff] %vm43_vm0, %v250_v62 }

// kernel: sharp_attention_forward.5
= control target key start
LH: loop header
LB: loop body
LE: loop exit
PB: predicated region body
PF: predicated region fallthrough
CT: control target
= control target key end

     0   :  { %s1017_s12 = smov 0   ;;  %s1019_s13 = smov 0   ;;  %s1145_s0 = inlined_call_operand.vmem [shape: f32[2,4,32,16], index: 0, kind: input, shape index: {}]   ;;  %s1146_s1 = inlined_call_operand.vmem [shape: f32[2,4,32,16], index: 1, kind: input, shape index: {}]   ;;  %s1147_s2 = inlined_call_operand.vmem [shape: f32[2,4,32,16], index: 2, kind: input, shape index: {}]   ;;  %s1148_s3 = inlined_call_operand.vmem [shape: f32[2,4,32,16], index: 3, kind: output, shape index: {}]  }
   0x1   :  { %s1021_s14 = smov 0   ;;  %s1023_s15 = smov 0  }
   0x2   :  { %s1025_s16 = smov 0   ;;  %s1027_s17 = smov 0  }
   0x3   :  { %s1029_s18 = smov 0   ;;  %s1031_s19 = smov 0  }
   0x4   :  { %s1033_s20 = smov 0  }
   0x5 LB: > { %s28_s21 = sadd.s32 1, %s975_s16  ;;  %s31_s22 = sadd.s32 1, %s979_s17  ;;  %s991_s20 = sphi %s1033_s20, %s13_s20   ;;  %s987_s19 = sphi %s1031_s19, %s1158_s19   ;;  %s983_s18 = sphi %s1029_s18, %s1157_s18   ;;  %s979_s17 = sphi %s1027_s17, %s1156_s17   ;;  %s975_s16 = sphi %s1025_s16, %s1155_s16   ;;  %s971_s15 = sphi %s1023_s15, %s1154_s15   ;;  %s967_s14 = sphi %s1021_s14, %s1153_s14   ;;  %s963_s13 = sphi %s1019_s13, %s1152_s13   ;;  %s959_s12 = sphi %s1017_s12, %s1151_s12  }
   0x6   : > { %p29_p0 = scmp.ge.s32.totalorder %s28_s21, 4  ;;  %p790_p1 = scmp.ge.s32.totalorder %s991_s20, 1 }
   0x7   : > { %p222_p2 = scmp.lt.s32.totalorder %s991_s20, 65  ;;  %s35_s23 = sadd.s32 1, %s983_s18 }
   0x8   : > { %s1160_s21 = smov (%p29_p0, %s28_s21), 0  ;;  %s1162_s22 = smov (!%p29_p0, %s31_s22), %s979_s17 }
   0x9   : > { %p33_p3 = scmp.ge.s32.totalorder %s1162_s22, 2  ;;  %p223_p4 = pnand %p790_p1, %p222_p2 }
   0xa   : > { %s39_s24 = sadd.s32 1, %s987_s19  ;;  %s791_s25 = sshll.u32 (!%p223_p4), %s963_s13, 1 }
   0xb   : > { %s1164_s22 = smov (%p33_p3, %s1162_s22), 0  ;;  %s1166_s23 = smov (!%p33_p3, %s35_s23), %s983_s18 }
   0xc   : > { %p37_p5 = scmp.ge.s32.totalorder %s1166_s23, 4  ;;  %226 = sbr.rel (%p223_p4) target bundleno = 840 (0x348), region = 32 }
   0xd   : > { %p287_p7 = scmp.lt.s32.totalorder (!%p223_p4), %s971_s15, 1  ;;  %p289_p8 = scmp.lt.s32.totalorder (!%p223_p4), %s967_s14, 3 }
   0xe   : > { %s1168_s23 = smov (%p37_p5, %s1166_s23), 0  ;;  %s1170_s24 = smov (!%p37_p5, %s39_s24), %s987_s19 }
   0xf   : > { %p41_p6 = scmp.ge.s32.totalorder %s1170_s24, 2  ;;  %p291_p9 = scmp.lt.s32.totalorder (!%p223_p4), %s791_s25, 3 }
  0x10   : > { %p304_p10 = scmp.lt.s32.totalorder (!%p223_p4), %s959_s12, 3  ;;  %p805_p11 = scmp.ne.s32.totalorder (!%p223_p4), %s959_s12, 0 }
  0x11   : > { %s1172_s24 = smov (%p41_p6, %s1170_s24), 0 }
  0x12   : > { %1149 = sst [smem:[#allocation5_spill]] %s1172_s24 }
  0x13   : > { %s1174_s15 = smov (!%p287_p7, %s971_s15), 1  ;;  %s1176_s14 = smov (!%p289_p8, %s967_s14), 3 }
  0x14   : > { %s1178_s25 = smov (!%p291_p9, %s791_s25), 3  ;;  %s792_s26 = sshll.u32 %s1176_s14, 2  ;;  %vm346_vm0 = vcmask (!%p805_p11), 7168   ;;  %vm351_vm1 = vcmask (!%p805_p11), 130048   ;;  %v993_v4 = vmov (!%p805_p11), -inf   ;;  %v994_v5 = vmov (!%p805_p11), 0.0  }
  0x15   : > { %s793_s27 = sshll.u32 %s1174_s15, 4  ;;  %s294_s28 = sadd.s32 %s792_s26, %s1178_s25  ;;  %347 = vst.msk [vmem:[#allocation2] sm:$0xff] (!%p805_p11), %vm346_vm0, %v993_v4  ;;  %348 = vst.msk [vmem:[#allocation2 + $0x8] sm:$0xff] (!%p805_p11), %vm346_vm0, %v993_v4 }
  0x16   : > { %s296_s29 = sadd.s32 %s793_s27, %s294_s28  ;;  %349 = vst.msk [vmem:[#allocation3] sm:$0xff] (!%p805_p11), %vm346_vm0, %v994_v5  ;;  %350 = vst.msk [vmem:[#allocation3 + $0x8] sm:$0xff] (!%p805_p11), %vm346_vm0, %v994_v5 }
  0x17   : > { %s794_s30 = sshll.u32 %s296_s29, 3  ;;  %352 = vst.msk [vmem:[#allocation4] sm:$0xff] (!%p805_p11), %vm351_vm1, %v994_v5  ;;  %353 = vst.msk [vmem:[#allocation4 + $0x8] sm:$0xff] (!%p805_p11), %vm351_vm1, %v994_v5 }
  0x18   : > { %s298_s6 = scalar_lea.vmem %s1145_s0, %s794_s30  ;;  %s1087_s9 = scalar_lea.vmem %s1148_s3, %s794_s30 }
  0x19   : > { %s305_s10 = scalar_select %p304_p10, %s959_s12, 3  ;;  %v338_v0 = vld [vmem:[%s298_s6] sm:$0xff]  ;;  %v339_v1 = vld [vmem:[%s298_s6 + $0x8] sm:$0xff] }
  0x1a   : > { %345 = sbr.rel (%p805_p11) target bundleno = 33 (0x21), region = 36 }
  0x1b   : > { %s307_s11 = sadd.s32 %s792_s26, %s305_s10 }
  0x1c   : > { %s309_s13 = sadd.s32 %s793_s27, %s307_s11 }
  0x1d   : > { %s797_s14 = sshll.u32 %s309_s13, 3 }
  0x1e   : > { %s311_s28 = scalar_lea.vmem %s1146_s1, %s797_s14  ;;  %s323_s4 = scalar_lea.vmem %s1147_s2, %s797_s14 }
  0x1f   : > { %v340_v2 = vld [vmem:[%s311_s28] sm:$0xff] }
  0x20   : > { %v341_v3 = vld [vmem:[%s323_s4] sm:$0xff] }
  0x21 PF: > { %vm354_vm2 = vcmask 130048   ;;  %825 = vmatprep.subr.mxu1 %v341_v3  ;;  %vm443_vm3 = vcmask 64512   ;;  %v995_v12 = vmov 0   ;;  %v441_v13 = vld [vmem:[#allocation2] sm:$0xff]  ;;  %vm486_vm4 = vcmask 7168   ;;  %v442_v16 = vld [vmem:[#allocation2 + $0x8] sm:$0xff] }
  0x22   : > { %820 = vmatprep.subr.msk.mxu0 %vm354_vm2, %v340_v2  ;;  %822 = vmatprep.mubr.msk.f32.mxu0 %vm354_vm2, %v338_v0  ;;  %v474_v35 = vld [vmem:[#allocation3] sm:$0xff]  ;;  %v475_v38 = vld [vmem:[#allocation3 + $0x8] sm:$0xff]  ;;  %v490_v43 = vld [vmem:[#allocation4 + $0x8] sm:$0xff]  ;;  %p811_p12 = scmp.ne.s32.totalorder %s959_s12, 3 }
  0x23   : > { %821 = vmatpush3.xpose.msk.msra.mxu0 %vm354_vm2, %v340_v2  ;;  %826 = vmatpush3.msra.mxu1 %v341_v3  ;;  %v489_v45 = vld [vmem:[#allocation4] sm:$0xff]  ;;  %v996_v55 = vmov (!%p811_p12), 0  }
  0x24   : > { %906 = vset.pattern.permute.xlu1 %v995_v12  ;;  %907 = vset.pattern.permute.xlu0 %v995_v12 }
  0x26   : > { %823 = vmatmul.mubr.msk.f32.vlgmr.msra.gmra.mrb[0].mxu0 %vm354_vm2, %v339_v1 }
  0xf9   : > { %v824_v6 = vpop.f32.mrb[0].mxu0 }
  0xfa   : > { %v430_v7 = vpop.f32.mrb[1].mxu0  ;;  %v440_v9 = vmul.f32 0.25, %v824_v6 }
  0xfb   : > { %v439_v8 = vmul.f32 0.25, %v430_v7 }
  0xfc   : > { %v447_v11 = vsel %vm443_vm3, %v440_v9, -inf }
  0xfd   : > { %v444_v10 = vsel %vm443_vm3, %v439_v8, -inf }
  0xfe   : > { %445 = vmax.xlane.f32.xlu0 %v444_v10 }
 0x102   : > { %448 = vmax.xlane.f32.xlu0 %v447_v11 }
 0x18b   : > { %v446_v14 = vpop.xlane.xlu0 %445 }
 0x18c   : > { %v450_v15 = vmax.f32 %v441_v13, %v446_v14 }
 0x18e   : > { %v452_v17 = vsub.f32 %v441_v13, %v450_v15  ;;  %588 = vst.msk [vmem:[#allocation2] sm:$0xff] %vm486_vm4, %v450_v15  ;;  %460 = vperm.xlu1 %906, %v450_v15  }
 0x18f   : > { %v449_v18 = vpop.xlane.xlu0 %448 }
 0x190   : > { %v451_v19 = vmax.f32 %v442_v16, %v449_v18  ;;  %v454_v32 = vmul.f32 1.442695, %v452_v17 }
 0x192   : > { %v453_v20 = vsub.f32 %v442_v16, %v451_v19  ;;  %589 = vst.msk [vmem:[#allocation2 + $0x8] sm:$0xff] %vm486_vm4, %v451_v19  ;;  %465 = vperm.xlu1 %906, %v451_v19  }
 0x194   : > { %v456_v31 = vmul.f32 1.442695, %v453_v20 }
 0x20d   : > { %v461_v21 = vpop.permute.xlu1 %460 }
 0x20e   : > { %v468_v22 = vsub.f32 %v439_v8, %v461_v21 }
 0x210   : > { %v470_v23 = vmul.f32 1.442695, %v468_v22 }
 0x211   : > { %v466_v24 = vpop.permute.xlu1 %465 }
 0x212   : > { %908 = vpow2.f32 %v470_v23  ;;  %v469_v25 = vsub.f32 %v440_v9, %v466_v24 }
 0x214   : > { %v472_v26 = vmul.f32 1.442695, %v469_v25 }
 0x216   : > { %910 = vpow2.f32 %v472_v26 }
 0x217   : > { %912 = vpow2.f32 %v456_v31 }
 0x218   : > { %914 = vpow2.f32 %v454_v32 }
 0x21c   : > { %v909_v27 = vpop.eup %908 }
 0x21d   : > { %827 = vmatprep.mubr.msk.f32.mxu1 %vm443_vm3, %v909_v27  ;;  %v478_v28 = vsel %vm443_vm3, %v909_v27, 0.0 }
 0x21e   : > { %479 = vadd.xlane.f32.xlu0 %v478_v28 }
 0x220   : > { %v911_v29 = vpop.eup %910 }
 0x221   : > { %828 = vmatmul.mubr.msk.f32.vlgmr.msra.gmra.mrb[0].mxu1 %vm443_vm3, %v911_v29  ;;  %v481_v30 = vsel %vm443_vm3, %v911_v29, 0.0  ;;  %v913_v33 = vpop.eup %912 }
 0x222   : > { %482 = vadd.xlane.f32.xlu1 %v481_v30  ;;  %v915_v34 = vpop.eup %914  ;;  %v477_v40 = vmul.f32 %v913_v33, %v475_v38 }
 0x223   : > { %v476_v36 = vmul.f32 %v915_v34, %v474_v35 }
 0x233   : > { %498 = vperm.xlu1 %906, %v913_v33  }
 0x234   : > { %493 = vperm.xlu0 %907, %v915_v34  }
 0x238   : > { %916 = vset.pattern.permute.xlu0 (!%p811_p12), %v996_v55 }
 0x2ab   : > { %v480_v37 = vpop.xlane.xlu0 %479 }
 0x2ac   : > { %v484_v39 = vadd.f32 %v480_v37, %v476_v36 }
 0x2ae   : > { %487 = vst.msk [vmem:[#allocation3] sm:$0xff] %vm486_vm4, %v484_v39 }
 0x2af   : > { %v483_v41 = vpop.xlane.xlu1 %482 }
 0x2b0   : > { %v485_v42 = vadd.f32 %v483_v41, %v477_v40 }
 0x2b2   : > { %488 = vst.msk [vmem:[#allocation3 + $0x8] sm:$0xff] %vm486_vm4, %v485_v42 }
 0x2b3   : > { %v499_v44 = vpop.permute.xlu1 %498  ;;  %v494_v46 = vpop.permute.xlu0 %493 }
 0x2b4   : > { %v502_v47 = vmul.f32 %v499_v44, %v490_v43  ;;  %v501_v48 = vmul.f32 %v494_v46, %v489_v45 }
 0x2b5   : > { %v594_v53 = vld [vmem:[#allocation3] sm:$0xff] (!%p811_p12) }
 0x2b6   : > { %917 = vrcp.f32 (!%p811_p12), %v594_v53 }
 0x2b9   : > { %v595_v54 = vld [vmem:[#allocation3 + $0x8] sm:$0xff] (!%p811_p12) }
 0x2ba   : > { %919 = vrcp.f32 (!%p811_p12), %v595_v54 }
 0x2c0   : > { %v918_v56 = vpop.eup (!%p811_p12), %917 }
 0x2c1   : > { %602 = vperm.xlu0 (!%p811_p12), %916, %v918_v56  }
 0x2c4   : > { %v920_v57 = vpop.eup (!%p811_p12), %919 }
 0x2c5   : > { %607 = vperm.xlu0 (!%p811_p12), %916, %v920_v57  }
 0x2f2   : > { %593 = sbr.rel (%p811_p12) target bundleno = 840 (0x348), region = 40 }
 0x2f4   : > { %v829_v49 = vpop.f32.mrb[0].mxu1 }
 0x2f5   : > { %v585_v50 = vadd.f32 %v829_v49, %v502_v47  ;;  %v575_v51 = vpop.f32.mrb[1].mxu1 }
 0x2f6   : > { %v584_v52 = vadd.f32 %v575_v51, %v501_v48 }
 0x2f7   : > { %587 = vst.msk [vmem:[#allocation4 + $0x8] sm:$0xff] %vm354_vm2, %v585_v50 }
 0x2f8   : > { %586 = vst.msk [vmem:[#allocation4] sm:$0xff] %vm354_vm2, %v584_v52 }
 0x2fe   : > { %v599_v61 = vld [vmem:[#allocation4 + $0x8] sm:$0xff] }
 0x2ff   : > { %v598_v58 = vld [vmem:[#allocation4] sm:$0xff] }
 0x340   : > { %v603_v59 = vpop.permute.xlu0 %602 }
 0x341   : > { %v610_v60 = vmul.f32 %v603_v59, %v598_v58 }
 0x343   : > { %612 = vst.msk [vmem:[%s1087_s9] sm:$0xff] %vm354_vm2, %v610_v60 }
 0x344   : > { %v608_v62 = vpop.permute.xlu0 %607 }
 0x345   : > { %v611_v63 = vmul.f32 %v608_v62, %v599_v61 }
 0x347   : > { %613 = vst.msk [vmem:[%s1087_s9 + $0x8] sm:$0xff] %vm354_vm2, %v611_v63 }
 0x348 PF: > { %s13_s20 = sadd.s32 1, %s991_s20   ;;  %s1150_s24 = sld [smem:[#allocation5_spill]] }
 0x349   : > { %p10_p13 = scmp.ge.s32.totalorder %s13_s20, 66   ;;  %s1151_s12 = smov %s975_s16 }
 0x34a   : > { %s1152_s13 = smov %s979_s17  ;;  %s1153_s14 = smov %s983_s18 }
 0x34b   : > { %s1154_s15 = smov %s987_s19  ;;  %s1155_s16 = smov %s1160_s21 }
 0x34c   : > { %s1156_s17 = smov %s1164_s22  ;;  %s1157_s18 = smov %s1168_s23 }
 0x34d   :  { %12 = sbr.rel (!%p10_p13) target bundleno = 5 (0x5), region = 76 }
 0x34e   : > { %s1158_s19 = smov %s1150_s24 }

// kernel: sharp_attention_forward.6
= control target key start
LH: loop header
LB: loop body
LE: loop exit
PB: predicated region body
PF: predicated region fallthrough
CT: control target
= control target key end

     0   :  { %s1124_s15 = smov 0   ;;  %s1126_s16 = smov 0   ;;  %s1255_s0 = inlined_call_operand.vmem [shape: f32[2,4,32,16], index: 0, kind: input, shape index: {}]   ;;  %s1256_s1 = inlined_call_operand.vmem [shape: f32[2,4,32,16], index: 1, kind: input, shape index: {}]   ;;  %s1257_s2 = inlined_call_operand.vmem [shape: f32[2,4,32,16], index: 2, kind: input, shape index: {}]   ;;  %s1258_s3 = inlined_call_operand.vmem [shape: f32[2,4,32,16], index: 3, kind: input, shape index: {}]   ;;  %s1259_s4 = inlined_call_operand.vmem [shape: f32[2,4,32,16], index: 4, kind: output, shape index: {}]  }
   0x1   :  { %1260 = sst [smem:[#allocation7_spill]] %s1255_s0  ;;  %s1128_s17 = smov 0  }
   0x2   :  { %s1130_s18 = smov 0   ;;  %s1132_s19 = smov 0  }
   0x3   :  { %s1134_s20 = smov 0   ;;  %s1136_s21 = smov 0  }
   0x4   :  { %s1138_s22 = smov 0   ;;  %s1140_s23 = smov 0  }
   0x5 LB: > { %s29_s24 = sadd.s32 1, %s1077_s19  ;;  %s32_s25 = sadd.s32 1, %s1081_s20  ;;  %s1093_s23 = sphi %s1140_s23, %s14_s23   ;;  %s1089_s22 = sphi %s1138_s22, %s1273_s22   ;;  %s1085_s21 = sphi %s1136_s21, %s1272_s21   ;;  %s1081_s20 = sphi %s1134_s20, %s1271_s20   ;;  %s1077_s19 = sphi %s1132_s19, %s1270_s19   ;;  %s1073_s18 = sphi %s1130_s18, %s1269_s18   ;;  %s1069_s17 = sphi %s1128_s17, %s1268_s17   ;;  %s1065_s16 = sphi %s1126_s16, %s1267_s16   ;;  %s1061_s15 = sphi %s1124_s15, %s1266_s15  }
   0x6   : > { %p30_p0 = scmp.ge.s32.totalorder %s29_s24, 4  ;;  %p889_p1 = scmp.ge.s32.totalorder %s1093_s23, 1 }
   0x7   : > { %p268_p2 = scmp.lt.s32.totalorder %s1093_s23, 65  ;;  %s36_s26 = sadd.s32 1, %s1085_s21 }
   0x8   : > { %s1275_s24 = smov (%p30_p0, %s29_s24), 0  ;;  %s1277_s25 = smov (!%p30_p0, %s32_s25), %s1081_s20 }
   0x9   : > { %p34_p3 = scmp.ge.s32.totalorder %s1277_s25, 2  ;;  %p269_p4 = pnand %p889_p1, %p268_p2 }
   0xa   : > { %s40_s27 = sadd.s32 1, %s1089_s22  ;;  %s890_s28 = sshll.u32 (!%p269_p4), %s1065_s16, 1 }
   0xb   : > { %s1279_s25 = smov (%p34_p3, %s1277_s25), 0  ;;  %s1281_s26 = smov (!%p34_p3, %s36_s26), %s1085_s21 }
   0xc   : > { %p38_p5 = scmp.ge.s32.totalorder %s1281_s26, 4  ;;  %272 = sbr.rel (%p269_p4) target bundleno = 842 (0x34a), region = 36 }
   0xd   : > { %p347_p7 = scmp.lt.s32.totalorder (!%p269_p4), %s1073_s18, 1  ;;  %p349_p8 = scmp.lt.s32.totalorder (!%p269_p4), %s1069_s17, 3 }
   0xe   : > { %s1283_s26 = smov (%p38_p5, %s1281_s26), 0  ;;  %s1285_s27 = smov (!%p38_p5, %s40_s27), %s1089_s22 }
   0xf   : > { %1261 = sst [smem:[#allocation5_spill]] %s1283_s26  ;;  %p42_p6 = scmp.ge.s32.totalorder %s1285_s27, 2 }
  0x10   : > { %p351_p9 = scmp.lt.s32.totalorder (!%p269_p4), %s890_s28, 3  ;;  %p364_p10 = scmp.lt.s32.totalorder (!%p269_p4), %s1061_s15, 3 }
  0x11   : > { %s1287_s27 = smov (%p42_p6, %s1285_s27), 0  ;;  %s1263_s0 = sld [smem:[#allocation7_spill]] (!%p269_p4) }
  0x12   : > { %1262 = sst [smem:[#allocation6_spill]] %s1287_s27  ;;  %p907_p11 = scmp.ne.s32.totalorder (!%p269_p4), %s1061_s15, 0 }
  0x13   : > { %s1289_s18 = smov (!%p347_p7, %s1073_s18), 1  ;;  %s1291_s17 = smov (!%p349_p8, %s1069_s17), 3 }
  0x14   : > { %s1293_s28 = smov (!%p351_p9, %s890_s28), 3  ;;  %s891_s29 = sshll.u32 %s1291_s17, 2  ;;  %vm421_vm0 = vcmask (!%p907_p11), 7168   ;;  %vm426_vm1 = vcmask (!%p907_p11), 130048   ;;  %v1095_v7 = vmov (!%p907_p11), -inf   ;;  %v1096_v8 = vmov (!%p907_p11), 0.0  }
  0x15   : > { %s892_s30 = sshll.u32 %s1289_s18, 4  ;;  %s354_s5 = sadd.s32 %s891_s29, %s1293_s28  ;;  %422 = vst.msk [vmem:[#allocation2] sm:$0xff] (!%p907_p11), %vm421_vm0, %v1095_v7  ;;  %423 = vst.msk [vmem:[#allocation2 + $0x8] sm:$0xff] (!%p907_p11), %vm421_vm0, %v1095_v7 }
  0x16   : > { %s356_s6 = sadd.s32 %s892_s30, %s354_s5  ;;  %424 = vst.msk [vmem:[#allocation3] sm:$0xff] (!%p907_p11), %vm421_vm0, %v1096_v8  ;;  %425 = vst.msk [vmem:[#allocation3 + $0x8] sm:$0xff] (!%p907_p11), %vm421_vm0, %v1096_v8 }
  0x17   : > { %s893_s7 = sshll.u32 %s356_s6, 3  ;;  %427 = vst.msk [vmem:[#allocation4] sm:$0xff] (!%p907_p11), %vm426_vm1, %v1096_v8  ;;  %428 = vst.msk [vmem:[#allocation4 + $0x8] sm:$0xff] (!%p907_p11), %vm426_vm1, %v1096_v8 }
  0x18   : > { %s358_s10 = scalar_lea.vmem %s1263_s0, %s893_s7  ;;  %s1194_s13 = scalar_lea.vmem %s1259_s4, %s893_s7 }
  0x19   : > { %s365_s14 = scalar_select %p364_p10, %s1061_s15, 3  ;;  %v414_v0 = vld [vmem:[%s358_s10] sm:$0xff]  ;;  %v415_v1 = vld [vmem:[%s358_s10 + $0x8] sm:$0xff] }
  0x1b   : > { %s367_s16 = sadd.s32 %s891_s29, %s365_s14 }
  0x1c   : > { %s369_s27 = sadd.s32 %s892_s30, %s367_s16  ;;  %420 = sbr.rel (%p907_p11) target bundleno = 35 (0x23), region = 40 }
  0x1d   : > { %s896_s17 = sshll.u32 %s369_s27, 3 }
  0x1e   : > { %s371_s5 = scalar_lea.vmem %s1256_s1, %s896_s17  ;;  %s383_s8 = scalar_lea.vmem %s1257_s2, %s896_s17 }
  0x1f   : > { %s395_s11 = scalar_lea.vmem %s1258_s3, %s896_s17  ;;  %v410_v2 = vld [vmem:[%s383_s8] sm:$0xff] }
  0x20   : > { %v416_v3 = vld [vmem:[%s371_s5] sm:$0xff]  ;;  %v411_v4 = vmul.f32 2.0, %v410_v2 }
  0x21   : > { %v412_v5 = vld [vmem:[%s395_s11] sm:$0xff] }
  0x22   : > { %v413_v6 = vsub.f32 %v411_v4, %v412_v5 }
  0x23 PF: > { %vm429_vm2 = vcmask 130048   ;;  %vm518_vm3 = vcmask 64512   ;;  %v1097_v15 = vmov 0   ;;  %v516_v16 = vld [vmem:[#allocation2] sm:$0xff]  ;;  %vm561_vm4 = vcmask 7168   ;;  %v517_v19 = vld [vmem:[#allocation2 + $0x8] sm:$0xff] }
  0x24   : > { %927 = vmatprep.subr.mxu1 %v413_v6  ;;  %922 = vmatprep.subr.msk.mxu0 %vm429_vm2, %v416_v3  ;;  %v549_v38 = vld [vmem:[#allocation3] sm:$0xff]  ;;  %v550_v41 = vld [vmem:[#allocation3 + $0x8] sm:$0xff]  ;;  %v565_v46 = vld [vmem:[#allocation4 + $0x8] sm:$0xff]  ;;  %p913_p12 = scmp.ne.s32.totalorder %s1061_s15, 3 }
  0x25   : > { %924 = vmatprep.mubr.msk.f32.mxu0 %vm429_vm2, %v414_v0  ;;  %923 = vmatpush3.xpose.msk.msra.mxu0 %vm429_vm2, %v416_v3  ;;  %v564_v48 = vld [vmem:[#allocation4] sm:$0xff]  ;;  %v1098_v58 = vmov (!%p913_p12), 0  }
  0x26   : > { %928 = vmatpush3.msra.mxu1 %v413_v6  ;;  %1008 = vset.pattern.permute.xlu1 %v1097_v15 }
  0x27   : > { %1009 = vset.pattern.permute.xlu0 %v1097_v15 }
  0x28   : > { %925 = vmatmul.mubr.msk.f32.vlgmr.msra.gmra.mrb[0].mxu0 %vm429_vm2, %v415_v1 }
  0xfb   : > { %v926_v9 = vpop.f32.mrb[0].mxu0 }
  0xfc   : > { %v505_v10 = vpop.f32.mrb[1].mxu0  ;;  %v515_v12 = vmul.f32 0.25, %v926_v9 }
  0xfd   : > { %v514_v11 = vmul.f32 0.25, %v505_v10 }
  0xfe   : > { %v522_v14 = vsel %vm518_vm3, %v515_v12, -inf }
  0xff   : > { %v519_v13 = vsel %vm518_vm3, %v514_v11, -inf }
 0x100   : > { %520 = vmax.xlane.f32.xlu0 %v519_v13 }
 0x104   : > { %523 = vmax.xlane.f32.xlu0 %v522_v14 }
 0x18d   : > { %v521_v17 = vpop.xlane.xlu0 %520 }
 0x18e   : > { %v525_v18 = vmax.f32 %v516_v16, %v521_v17 }
 0x190   : > { %v527_v20 = vsub.f32 %v516_v16, %v525_v18  ;;  %663 = vst.msk [vmem:[#allocation2] sm:$0xff] %vm561_vm4, %v525_v18  ;;  %535 = vperm.xlu1 %1008, %v525_v18  }
 0x191   : > { %v524_v21 = vpop.xlane.xlu0 %523 }
 0x192   : > { %v526_v22 = vmax.f32 %v517_v19, %v524_v21  ;;  %v529_v35 = vmul.f32 1.442695, %v527_v20 }
 0x194   : > { %v528_v23 = vsub.f32 %v517_v19, %v526_v22  ;;  %664 = vst.msk [vmem:[#allocation2 + $0x8] sm:$0xff] %vm561_vm4, %v526_v22  ;;  %540 = vperm.xlu1 %1008, %v526_v22  }
 0x196   : > { %v531_v34 = vmul.f32 1.442695, %v528_v23 }
 0x20f   : > { %v536_v24 = vpop.permute.xlu1 %535 }
 0x210   : > { %v543_v25 = vsub.f32 %v514_v11, %v536_v24 }
 0x212   : > { %v545_v26 = vmul.f32 1.442695, %v543_v25 }
 0x213   : > { %v541_v27 = vpop.permute.xlu1 %540 }
 0x214   : > { %1010 = vpow2.f32 %v545_v26  ;;  %v544_v28 = vsub.f32 %v515_v12, %v541_v27 }
 0x216   : > { %v547_v29 = vmul.f32 1.442695, %v544_v28 }
 0x218   : > { %1012 = vpow2.f32 %v547_v29 }
 0x219   : > { %1014 = vpow2.f32 %v531_v34 }
 0x21a   : > { %1016 = vpow2.f32 %v529_v35 }
 0x21e   : > { %v1011_v30 = vpop.eup %1010 }
 0x21f   : > { %929 = vmatprep.mubr.msk.f32.mxu1 %vm518_vm3, %v1011_v30  ;;  %v553_v31 = vsel %vm518_vm3, %v1011_v30, 0.0 }
 0x220   : > { %554 = vadd.xlane.f32.xlu0 %v553_v31 }
 0x222   : > { %v1013_v32 = vpop.eup %1012 }
 0x223   : > { %930 = vmatmul.mubr.msk.f32.vlgmr.msra.gmra.mrb[0].mxu1 %vm518_vm3, %v1013_v32  ;;  %v556_v33 = vsel %vm518_vm3, %v1013_v32, 0.0  ;;  %v1015_v36 = vpop.eup %1014 }
 0x224   : > { %557 = vadd.xlane.f32.xlu1 %v556_v33  ;;  %v1017_v37 = vpop.eup %1016  ;;  %v552_v43 = vmul.f32 %v1015_v36, %v550_v41 }
 0x225   : > { %v551_v39 = vmul.f32 %v1017_v37, %v549_v38 }
 0x235   : > { %573 = vperm.xlu1 %1008, %v1015_v36  }
 0x236   : > { %568 = vperm.xlu0 %1009, %v1017_v37  }
 0x23a   : > { %1018 = vset.pattern.permute.xlu0 (!%p913_p12), %v1098_v58 }
 0x2ad   : > { %v555_v40 = vpop.xlane.xlu0 %554 }
 0x2ae   : > { %v559_v42 = vadd.f32 %v555_v40, %v551_v39 }
 0x2b0   : > { %562 = vst.msk [vmem:[#allocation3] sm:$0xff] %vm561_vm4, %v559_v42 }
 0x2b1   : > { %v558_v44 = vpop.xlane.xlu1 %557 }
 0x2b2   : > { %v560_v45 = vadd.f32 %v558_v44, %v552_v43 }
 0x2b4   : > { %563 = vst.msk [vmem:[#allocation3 + $0x8] sm:$0xff] %vm561_vm4, %v560_v45 }
 0x2b5   : > { %v574_v47 = vpop.permute.xlu1 %573  ;;  %v569_v49 = vpop.permute.xlu0 %568 }
 0x2b6   : > { %v577_v50 = vmul.f32 %v574_v47, %v565_v46  ;;  %v576_v51 = vmul.f32 %v569_v49, %v564_v48 }
 0x2b7   : > { %v669_v56 = vld [vmem:[#allocation3] sm:$0xff] (!%p913_p12) }
 0x2b8   : > { %1019 = vrcp.f32 (!%p913_p12), %v669_v56 }
 0x2bb   : > { %v670_v57 = vld [vmem:[#allocation3 + $0x8] sm:$0xff] (!%p913_p12) }
 0x2bc   : > { %1021 = vrcp.f32 (!%p913_p12), %v670_v57 }
 0x2c2   : > { %v1020_v59 = vpop.eup (!%p913_p12), %1019 }
 0x2c3   : > { %677 = vperm.xlu0 (!%p913_p12), %1018, %v1020_v59  }
 0x2c6   : > { %v1022_v60 = vpop.eup (!%p913_p12), %1021 }
 0x2c7   : > { %682 = vperm.xlu0 (!%p913_p12), %1018, %v1022_v60  }
 0x2f4   : > { %668 = sbr.rel (%p913_p12) target bundleno = 842 (0x34a), region = 44 }
 0x2f6   : > { %v931_v52 = vpop.f32.mrb[0].mxu1 }
 0x2f7   : > { %v660_v53 = vadd.f32 %v931_v52, %v577_v50  ;;  %v650_v54 = vpop.f32.mrb[1].mxu1 }
 0x2f8   : > { %v659_v55 = vadd.f32 %v650_v54, %v576_v51 }
 0x2f9   : > { %662 = vst.msk [vmem:[#allocation4 + $0x8] sm:$0xff] %vm429_vm2, %v660_v53 }
 0x2fa   : > { %661 = vst.msk [vmem:[#allocation4] sm:$0xff] %vm429_vm2, %v659_v55 }
 0x300   : > { %v674_v0 = vld [vmem:[#allocation4 + $0x8] sm:$0xff] }
 0x301   : > { %v673_v61 = vld [vmem:[#allocation4] sm:$0xff] }
 0x342   : > { %v678_v62 = vpop.permute.xlu0 %677 }
 0x343   : > { %v685_v63 = vmul.f32 %v678_v62, %v673_v61 }
 0x345   : > { %687 = vst.msk [vmem:[%s1194_s13] sm:$0xff] %vm429_vm2, %v685_v63 }
 0x346   : > { %v683_v1 = vpop.permute.xlu0 %682 }
 0x347   : > { %v686_v2 = vmul.f32 %v683_v1, %v674_v0 }
 0x349   : > { %688 = vst.msk [vmem:[%s1194_s13 + $0x8] sm:$0xff] %vm429_vm2, %v686_v2 }
 0x34a PF: > { %s14_s23 = sadd.s32 1, %s1093_s23   ;;  %s1264_s0 = sld [smem:[#allocation5_spill]] }
 0x34b   : > { %p11_p13 = scmp.ge.s32.totalorder %s14_s23, 66   ;;  %s1265_s26 = sld [smem:[#allocation6_spill]] }
 0x34c   : > { %s1266_s15 = smov %s1077_s19  ;;  %s1267_s16 = smov %s1081_s20 }
 0x34d   : > { %s1268_s17 = smov %s1085_s21  ;;  %s1269_s18 = smov %s1089_s22 }
 0x34e   : > { %s1270_s19 = smov %s1275_s24  ;;  %s1271_s20 = smov %s1279_s25 }
 0x34f   :  { %13 = sbr.rel (!%p11_p13) target bundleno = 5 (0x5), region = 83 }
 0x350   : > { %s1272_s21 = smov %s1264_s0 }
 0x351   : > { %s1273_s22 = smov %s1265_s26 }

// kernel: sharp_attention_forward.7
= control target key start
LH: loop header
LB: loop body
LE: loop exit
PB: predicated region body
PF: predicated region fallthrough
CT: control target
= control target key end

     0   :  { %vm38_vm0 = vcmask 523264   ;;  %s476_s0 = inlined_call_operand.vmem [shape: f32[64,64], index: 0, kind: input, shape index: {}]   ;;  %s477_s1 = inlined_call_operand.vmem [shape: f32[64,64], index: 1, kind: input, shape index: {}]   ;;  %s478_s2 = inlined_call_operand.vmem [shape: f32[1,64], index: 2, kind: input, shape index: {}]   ;;  %s479_s3 = inlined_call_operand.hbm [shape: f32[64,64], index: 3, kind: output, shape index: {}]  }
   0x1   :  { %v23_v0 = vld [vmem:[%s477_s1] sm:$0xff]  ;;  %v24_v1 = vld [vmem:[%s477_s1 + $0x8] sm:$0xff]  ;;  %v25_v2 = vld [vmem:[%s477_s1 + $0x10] sm:$0xff] }
   0x2   :  { %v277_v3 = vpack.c.bf16 %v24_v1, %v23_v0  ;;  %vm370_vm1 = vmpackc.low %vm38_vm0, %vm38_vm0  ;;  %v26_v5 = vld [vmem:[%s477_s1 + $0x18] sm:$0xff]  ;;  %v15_v7 = vld [vmem:[%s476_s0] sm:$0xff] }
   0x3   :  { %v283_v6 = vpack.c.bf16 %v26_v5, %v25_v2  ;;  %v19_v8 = vld [vmem:[%s476_s0 + $0x20] sm:$0xff] }
   0x4   :  { %279 = vmatprep.subr.msk.bf16.mxu0 %vm370_vm1, %v277_v3  ;;  %301 = vmatprep.subr.msk.bf16.mxu1 %vm370_vm1, %v277_v3 }
   0x5   :  { %282 = vmatpush3.bf16.xpose.msk.msra.mxu0 %vm370_vm1, %v277_v3  ;;  %305 = vmatpush3.bf16.xpose.msk.msra.mxu1 %vm370_vm1, %v277_v3 }
   0x6   :  { %285 = vmatprep.subr.msk.bf16.mxu0 %vm370_vm1, %v283_v6  ;;  %302 = vmatprep.subr.msk.bf16.mxu1 %vm370_vm1, %v283_v6 }
   0x7   :  { %8 = vsyncpa [#allocation3], 0  ;;  %v27_v9 = vld [vmem:[%s477_s1 + $0x20] sm:$0xff]  ;;  %v28_v10 = vld [vmem:[%s477_s1 + $0x28] sm:$0xff]  ;;  %265 = vmatprep.mubr.msk.f32.mxu0 %vm38_vm0, %v15_v7  ;;  %271 = vmatprep.mubr.msk.f32.mxu1 %vm38_vm0, %v19_v8  ;;  %s336_s18 = smov [#allocation2]  }
   0x8   :  { %v289_v11 = vpack.c.bf16 %v28_v10, %v27_v9  ;;  %v29_v12 = vld [vmem:[%s477_s1 + $0x30] sm:$0xff]  ;;  %v30_v13 = vld [vmem:[%s477_s1 + $0x38] sm:$0xff]  ;;  %v16_v15 = vld [vmem:[%s476_s0 + $0x8] sm:$0xff]  ;;  %s205_s19 = sshll.u32 %s336_s18, 4  ;;  %s206_s19 = int_to_ptr.vmem [resolvable:$true] %s205_s19 }
   0x9   :  { %v295_v14 = vpack.c.bf16 %v30_v13, %v29_v12  ;;  %v20_v16 = vld [vmem:[%s476_s0 + $0x28] sm:$0xff]  ;;  %v17_v17 = vld [vmem:[%s476_s0 + $0x10] sm:$0xff]  ;;  %v18_v19 = vld [vmem:[%s476_s0 + $0x18] sm:$0xff]  ;;  %p317_p1 = scmp.lt.s32.totalorder %s206_s19, %s206_s19 }
   0xa   :  { %v21_v18 = vld [vmem:[%s476_s0 + $0x30] sm:$0xff]  ;;  %v22_v20 = vld [vmem:[%s476_s0 + $0x38] sm:$0xff]  ;;  %v216_v21 = vld [vmem:[%s478_s2] ss:$0 sm:$0xff]  ;;  %s312_s0 = scalar_lea.vmem %s206_s19, 1024 }
   0xb   :  { %p313_p0 = scmp.ne.s32.totalorder %s206_s19, %s312_s0  ;;  %p318_p2 = scmp.lt.s32.totalorder %s312_s0, %s312_s0 }
   0xd   :  { %288 = vmatpush3.bf16.xpose.msk.msra.mxu0 %vm370_vm1, %v283_v6  ;;  %306 = vmatpush3.bf16.xpose.msk.msra.mxu1 %vm370_vm1, %v283_v6  ;;  %p319_p3 = por %p318_p2, %p317_p1 }
   0xe   :  { %291 = vmatprep.subr.msk.bf16.mxu0 %vm370_vm1, %v289_v11  ;;  %303 = vmatprep.subr.msk.bf16.mxu1 %vm370_vm1, %v289_v11 }
   0xf   :  { %p320_p4 = pnand %p319_p3, %p313_p0 }
  0x15   :  { %294 = vmatpush3.bf16.xpose.msk.msra.mxu0 %vm370_vm1, %v289_v11  ;;  %307 = vmatpush3.bf16.xpose.msk.msra.mxu1 %vm370_vm1, %v289_v11 }
  0x16   :  { %297 = vmatprep.subr.msk.bf16.mxu0 %vm370_vm1, %v295_v14  ;;  %304 = vmatprep.subr.msk.bf16.mxu1 %vm370_vm1, %v295_v14 }
  0x1d   :  { %300 = vmatpush3.bf16.xpose.msk.msra.mxu0 %vm370_vm1, %v295_v14  ;;  %308 = vmatpush3.bf16.xpose.msk.msra.mxu1 %vm370_vm1, %v295_v14 }
  0x24   :  { %266 = vmatmul.mubr.msk.f32.vlgmr.msra.gmra.mrb[0].mxu0 %vm38_vm0, %v16_v15  ;;  %272 = vmatmul.mubr.msk.f32.vlgmr.msra.gmra.mrb[0].mxu1 %vm38_vm0, %v20_v16 }
  0x25   :  { %268 = vmatprep.mubr.msk.f32.mxu0 %vm38_vm0, %v17_v17  ;;  %274 = vmatprep.mubr.msk.f32.mxu1 %vm38_vm0, %v21_v18 }
  0x28   :  { %269 = vmatmul.mubr.msk.f32.gmra.mrb[2].mxu0 %vm38_vm0, %v18_v19  ;;  %275 = vmatmul.mubr.msk.f32.gmra.mrb[2].mxu1 %vm38_vm0, %v22_v20 }
  0xf7   :  { %v267_v22 = vpop.f32.mrb[0].mxu0  ;;  %v273_v23 = vpop.f32.mrb[0].mxu1 }
  0xf8   :  { %v159_v24 = vadd.f32 %v267_v22, %v216_v21  ;;  %v179_v25 = vadd.f32 %v273_v23, %v216_v21  ;;  %v153_v26 = vpop.f32.mrb[1].mxu0  ;;  %v173_v27 = vpop.f32.mrb[1].mxu1 }
  0xf9   :  { %v154_v28 = vadd.f32 %v216_v21, %v153_v26  ;;  %v174_v29 = vadd.f32 %v216_v21, %v173_v27 }
  0xfa   :  { %193 = vst.msk [vmem:[#allocation2 + $0x8] sm:$0xff] %vm38_vm0, %v159_v24  ;;  %197 = vst.msk [vmem:[#allocation2 + $0x28] sm:$0xff] %vm38_vm0, %v179_v25 }
  0xfb   :  { %192 = vst.msk [vmem:[#allocation2] sm:$0xff] %vm38_vm0, %v154_v28  ;;  %196 = vst.msk [vmem:[#allocation2 + $0x20] sm:$0xff] %vm38_vm0, %v174_v29  ;;  %v270_v30 = vpop.f32.mrb[2].mxu0  ;;  %v276_v31 = vpop.f32.mrb[2].mxu1 }
  0xfc   :  { %v169_v32 = vadd.f32 %v270_v30, %v216_v21  ;;  %v189_v33 = vadd.f32 %v276_v31, %v216_v21  ;;  %v163_v34 = vpop.f32.mrb[3].mxu0  ;;  %v183_v35 = vpop.f32.mrb[3].mxu1 }
  0xfd   :  { %v164_v36 = vadd.f32 %v216_v21, %v163_v34  ;;  %v184_v37 = vadd.f32 %v216_v21, %v183_v35 }
  0xfe   :  { %195 = vst.msk [vmem:[#allocation2 + $0x18] sm:$0xff] %vm38_vm0, %v169_v32  ;;  %199 = vst.msk [vmem:[#allocation2 + $0x38] sm:$0xff] %vm38_vm0, %v189_v33 }
  0xff   :  { %194 = vst.msk [vmem:[#allocation2 + $0x10] sm:$0xff] %vm38_vm0, %v164_v36  ;;  %198 = vst.msk [vmem:[#allocation2 + $0x30] sm:$0xff] %vm38_vm0, %v184_v37 }
 0x100   :  { %323 = shalt.err (!%p320_p4)
}
 0x101   :  { %s324_s21 = scalar_lea.hbm %s479_s3, 1024 }
 0x102   :  { %p325_p5 = scmp.ne.s32.totalorder %s479_s3, %s324_s21  ;;  %p328_p6 = scmp.lt.u32.totalorder %s324_s21, %s479_s3 }
 0x104   :  { %p330_p7 = pnand %p328_p6, %p325_p5 }
 0x106   :  { %333 = shalt.err (!%p330_p7)
}
 0x107   :  { %s337_s26 = smov 128   ;;  %s338_s27 = smov 8  }
 0x108   :  { %211 = dma.vmem_to_hbm [thread:$0]  %s206_s19, 1024, %s479_s3, [#allocation3], %s337_s26, %s337_s26, %s338_s27  }
 0x109   :  { %334 = dma.done.wait [#allocation3], 1024  }
 0x10a   :  { %335 = vsyncadd [#allocation3], 4294966272 }
 0x10b   :  { %215 = vsyncpa [#allocation3], 1 }

</bundles_post_ra>
